<compile_context>
chip_gen: v5e
topology: v5e:2x2
jax: 0.10.0
libtpu: 0.0.40
codegen_flags: <defaults>
</compile_context>

<pallas_src>
import math
from functools import partial

import jax
import jax.numpy as jnp
from jax import lax
from jax.experimental import pallas as pl
from jax.experimental.pallas import tpu as pltpu


# ----------------------------- in-kernel helpers -----------------------------

def _layer_norm(x, gamma, beta, eps):
    """attentions.LayerNorm over the channel (last) axis, f32 math."""
    mean = jnp.mean(x, axis=-1, keepdims=True)
    var = jnp.mean((x - mean) ** 2, axis=-1, keepdims=True)
    return (x - mean) * lax.rsqrt(var + eps) * gamma + beta


def _packed_conv(x_f32, w_bf16, b_f32, t_in_b, *, seq_len, ksz):
    """'same' 1-D conv along time for batch-flattened rows x_f32 [B*T, Cin].

    The k time shifts ride the XLU (pltpu.roll); rows whose tap crosses a batch
    boundary (or the start/end of the sequence) are zeroed; all taps are packed
    along lanes into a [B*T, k*Cin] bf16 tile and applied as ONE MXU matmul
    against the packed weight w_bf16 [k*Cin, Cout].
    """
    bt = x_f32.shape[0]
    pad = ksz // 2
    taps = []
    for j in range(ksz):
        s = j - pad                                   # tap j reads x[t + s]
        if s == 0:
            xs = x_f32
        else:
            xs = pltpu.roll(x_f32, (-s) % bt, 0)
            valid = jnp.logical_and(t_in_b + s >= 0, t_in_b + s < seq_len)
            xs = xs * valid.astype(xs.dtype)          # zero wrapped / cross-batch rows
        taps.append(xs.astype(jnp.bfloat16))
    xk = jnp.concatenate(taps, axis=-1)               # [B*T, k*Cin] bf16
    return jnp.dot(xk, w_bf16, preferred_element_type=jnp.float32) + b_f32


# --------------------------- fully fused encoder kernel -----------------------

def _text_encoder_kernel(lens_ref,                                    # SMEM [B] (prefetch)
                         x_ref,                                       # [B*T, H] embedding
                         wqkv_ref, bqkv_ref, wo_ref, bo_ref,
                         g1_ref, b1n_ref, w1_ref, bf1_ref,
                         w2_ref, bf2_ref, g2_ref, b2n_ref,
                         wms_ref, bms_ref,
                         xo_ref, po_ref,                              # outputs
                         xres_ref,                                    # VMEM scratch [B*T, H]
                         *, B, T, n_heads, d_head, ksz, eps):
    layer = pl.program_id(0)
    n_layers = pl.num_programs(0)
    H = n_heads * d_head
    BT = B * T

    # ---- layer 0: bring the scaled embedding into the resident VMEM buffer ----
    @pl.when(layer == 0)
    def _():
        xres_ref[...] = x_ref[...].astype(jnp.float32)

    # ---- masks rebuilt in-register from SMEM lengths (no [B,T,T] HBM traffic) --
    row = lax.broadcasted_iota(jnp.int32, (BT, 1), 0)       # flattened row index
    t_in_b = row                                            # time index within batch row
    for b in range(1, B):
        t_in_b = jnp.where(row >= b * T, row - b * T, t_in_b)
    mask = jnp.zeros((BT, 1), jnp.float32)                  # sequence mask [B*T, 1]
    col_t = lax.broadcasted_iota(jnp.int32, (T, T), 1)
    row_t = lax.broadcasted_iota(jnp.int32, (T, T), 0)
    attn_bias = []                                          # per-batch additive [T,T] bias
    for b in range(B):
        lb = lens_ref[b]                                    # scalar length from SMEM
        mask = jnp.where(jnp.logical_and(row >= b * T, row < b * T + lb), 1.0, mask)
        ok = jnp.logical_and(col_t < lb, row_t < lb)        # == x_mask outer product
        attn_bias.append(jnp.where(ok, 0.0, -1e4).astype(jnp.float32))

    x = xres_ref[...]
    xm = x * mask                                           # x = x * x_mask

    # ---- MultiHeadAttention: fused conv_q/k/v as one matmul (scale folded in) --
    qkv = jnp.dot(xm.astype(jnp.bfloat16), wqkv_ref[0],
                  preferred_element_type=jnp.float32) + bqkv_ref[0]     # [B*T, 3H]
    attn_rows = []
    for b in range(B):                                      # block-diagonal (per-batch) attention
        blk = qkv[b * T:(b + 1) * T]                        # [T, 3H]

        # TODO(synk): heads are packed on the lane axis, so splitting them needs
        # d_head-wide lane slices (small lane-select copies); stacked once here.
        def heads(base):
            return jnp.stack([blk[:, base + h * d_head: base + (h + 1) * d_head]
                              for h in range(n_heads)], axis=0)          # [nh, T, dk]

        q, k, v = heads(0), heads(H), heads(2 * H)
        s = jnp.einsum('htd,hsd->hts', q.astype(jnp.bfloat16), k.astype(jnp.bfloat16),
                       preferred_element_type=jnp.float32)               # [nh, T, T]
        s = s + attn_bias[b][None]                          # masked_fill(mask==0, -1e4)
        s = s - jnp.max(s, axis=-1, keepdims=True)
        p = jnp.exp(s)
        p = p * pl.reciprocal(jnp.sum(p, axis=-1, keepdims=True), approx=True)
        o = jnp.einsum('hts,hsd->htd', p.astype(jnp.bfloat16), v.astype(jnp.bfloat16),
                       preferred_element_type=jnp.float32)               # [nh, T, dk]
        attn_rows.append(jnp.concatenate([o[h] for h in range(n_heads)], axis=-1))
    attn = jnp.concatenate(attn_rows, axis=0)               # [B*T, H]
    y = jnp.dot(attn.astype(jnp.bfloat16), wo_ref[0],
                preferred_element_type=jnp.float32) + bo_ref[0]          # conv_o

    # ---- x = norm_1(x + drop(y)) ------------------------------------------------
    x = _layer_norm(xm + y, g1_ref[0], b1n_ref[0], eps)

    # ---- FFN: conv1(x*m) -> relu -> conv2(.*m) -> *m ------------------------------
    h1 = _packed_conv(x * mask, w1_ref[0], bf1_ref[0], t_in_b, seq_len=T, ksz=ksz)
    h1 = jnp.maximum(h1, 0.0) * mask
    y2 = _packed_conv(h1, w2_ref[0], bf2_ref[0], t_in_b, seq_len=T, ksz=ksz) * mask

    # ---- x = norm_2(x + drop(y2)); keep resident for the next layer ---------------
    x = _layer_norm(x + y2, g2_ref[0], b2n_ref[0], eps)
    xres_ref[...] = x

    # ---- last layer: encoder tail x*mask + fused proj_m/proj_s --------------------
    @pl.when(layer == n_layers - 1)
    def _():
        xf = x * mask
        xo_ref[...] = xf.astype(xo_ref.dtype)
        ms = jnp.dot(xf.astype(jnp.bfloat16), wms_ref[...],
                     preferred_element_type=jnp.float32) + bms_ref[...]
        po_ref[...] = (ms * mask).astype(po_ref.dtype)


# --------------------------------- params -------------------------------------

def init_params(key, cfg):
    """Module-style parameters (f32, natural layouts)."""
    H, F_, O, V = (cfg["hidden_channels"], cfg["filter_channels"],
                   cfg["out_channels"], cfg["n_vocab"])
    k = cfg["kernel_size"]
    n_layers = cfg["n_layers"]

    def nrm(key, shape, scale):
        return scale * jax.random.normal(key, shape, dtype=jnp.float32)

    keys = jax.random.split(key, 2 + n_layers)
    params = {"emb": nrm(keys[0], (V, H), H ** (-0.5))}   # nn.Embedding init
    layers = []
    for i in range(n_layers):
        lk = jax.random.split(keys[2 + i], 8)
        layers.append({
            # fused conv_q/k/v (weight layout [Cin, 3*Cout]) and conv_o
            "wqkv": nrm(lk[0], (H, 3 * H), 0.05),
            "bqkv": jnp.zeros((1, 3 * H), jnp.float32),
            "wo": nrm(lk[1], (H, H), 0.05), "bo": jnp.zeros((1, H), jnp.float32),
            # LayerNorm 1
            "g1": jnp.ones((1, H), jnp.float32), "b1n": jnp.zeros((1, H), jnp.float32),
            # FFN conv_1 (H->F, k taps) / conv_2 (F->H, k taps), layout [k, Cin, Cout]
            "w1": nrm(lk[2], (k, H, F_), 0.05), "b1": nrm(lk[3], (1, F_), 0.02),
            "w2": nrm(lk[4], (k, F_, H), 0.05), "b2": nrm(lk[5], (1, H), 0.02),
            # LayerNorm 2
            "g2": jnp.ones((1, H), jnp.float32), "b2n": jnp.zeros((1, H), jnp.float32),
        })
    params["layers"] = layers
    # proj_m / proj_s fused into one [H, 2*O] 1x1-conv
    params["wms"] = nrm(keys[1], (H, 2 * O), 0.05)
    params["bms"] = jnp.zeros((1, 2 * O), jnp.float32)
    return params


def prepare_params(params, cfg):
    """Pack parameters into kernel-ready form (done once, outside the hot path):
    stack layers on a leading axis, fold 1/sqrt(d_head) into the q columns of
    the fused QKV weight/bias, pack conv taps [k,Cin,Cout] -> [k*Cin,Cout], and
    pre-cast all MXU weights to bf16 (biases / LayerNorm params stay f32)."""
    H = cfg["hidden_channels"]
    d_head = H // cfg["n_heads"]
    scale = 1.0 / math.sqrt(d_head)
    layers = params["layers"]

    def stk(name):
        return jnp.stack([lp[name] for lp in layers], axis=0)

    wqkv = stk("wqkv").at[:, :, :H].multiply(scale)     # fold softmax scale into q
    bqkv = stk("bqkv").at[:, :, :H].multiply(scale)

    def pack(w):                                        # [L, k, Cin, Cout] -> [L, k*Cin, Cout]
        L, k, ci, co = w.shape
        return w.reshape(L, k * ci, co)

    return {
        "emb": params["emb"],
        "wqkv": wqkv.astype(jnp.bfloat16), "bqkv": bqkv,
        "wo": stk("wo").astype(jnp.bfloat16), "bo": stk("bo"),
        "g1": stk("g1"), "b1n": stk("b1n"),
        "w1": pack(stk("w1")).astype(jnp.bfloat16), "b1": stk("b1"),
        "w2": pack(stk("w2")).astype(jnp.bfloat16), "b2": stk("b2"),
        "g2": stk("g2"), "b2n": stk("b2n"),
        "wms": params["wms"].astype(jnp.bfloat16), "bms": params["bms"],
    }


# --------------------------------- forward ------------------------------------

def text_encoder_forward(kparams, tokens, x_lengths, cfg):
    """Mirrors TextEncoder.forward(x, x_lengths, l=None, g=None, emo=None) with
    prenet=False, mean_only=False, window_size=None, block_length=None."""
    B, T = tokens.shape
    H = cfg["hidden_channels"]
    O = cfg["out_channels"]
    L = cfg["n_layers"]
    nh = cfg["n_heads"]
    BT = B * T

    # TODO(synk): embedding gather is data-dependent; kept as plain-JAX jnp.take.
    x = jnp.take(kparams["emb"], tokens, axis=0) * math.sqrt(H)      # [B, T, H]
    x_flat = x.reshape(BT, H)
    lens = x_lengths.astype(jnp.int32)

    kern = partial(_text_encoder_kernel, B=B, T=T, n_heads=nh, d_head=H // nh,
                   ksz=cfg["kernel_size"], eps=1e-4)

    def lspec(shape):       # stacked per-layer weight: one layer slice per grid step
        return pl.BlockSpec((1,) + tuple(shape[1:]),
                            lambda l, lens: (l,) + (0,) * (len(shape) - 1))

    def cspec(shape):       # layer-invariant operand (DMA'd once, stays resident)
        n = len(shape)
        return pl.BlockSpec(tuple(shape), lambda l, lens, _n=n: (0,) * _n)

    grid_spec = pltpu.PrefetchScalarGridSpec(
        num_scalar_prefetch=1,                  # x_lengths -> SMEM
        grid=(L,),
        in_specs=[
            cspec((BT, H)),                                         # embedding (flattened)
            lspec(kparams["wqkv"].shape), lspec(kparams["bqkv"].shape),
            lspec(kparams["wo"].shape),   lspec(kparams["bo"].shape),
            lspec(kparams["g1"].shape),   lspec(kparams["b1n"].shape),
            lspec(kparams["w1"].shape),   lspec(kparams["b1"].shape),
            lspec(kparams["w2"].shape),   lspec(kparams["b2"].shape),
            lspec(kparams["g2"].shape),   lspec(kparams["b2n"].shape),
            cspec(kparams["wms"].shape),  cspec(kparams["bms"].shape),
        ],
        out_specs=[cspec((BT, H)), cspec((BT, 2 * O))],
        scratch_shapes=[pltpu.VMEM((BT, H), jnp.float32)],          # resident activation
    )

    x_out, ms = pl.pallas_call(
        kern,
        out_shape=(jax.ShapeDtypeStruct((BT, H), jnp.float32),
                   jax.ShapeDtypeStruct((BT, 2 * O), jnp.float32)),
        grid_spec=grid_spec,
        compiler_params=pltpu.CompilerParams(
            # The layer axis is a sequential carry over the resident activation.
            # TODO(synk): for v7x, add a leading 'parallel' row-block axis (>=2
            # blocks) so both TensorCores are used; v5e/v6e are single-TC.
            dimension_semantics=("arbitrary",)),
    )(lens, x_flat,
      kparams["wqkv"], kparams["bqkv"], kparams["wo"], kparams["bo"],
      kparams["g1"], kparams["b1n"], kparams["w1"], kparams["b1"],
      kparams["w2"], kparams["b2"], kparams["g2"], kparams["b2n"],
      kparams["wms"], kparams["bms"])

    x_out = x_out.reshape(B, T, H)
    ms = ms.reshape(B, T, 2 * O)
    x_m, x_logs = ms[..., :O], ms[..., O:]
    x_mask = (jnp.arange(T)[None, :] < x_lengths[:, None]).astype(x_out.dtype)

    # TODO(synk): final NCW transposes left to XLA (single relayout of small outputs).
    return (x_out.transpose(0, 2, 1),      # [B, hidden, T]
            x_m.transpose(0, 2, 1),        # [B, out, T]
            x_logs.transpose(0, 2, 1),     # [B, out, T]
            x_mask[:, None, :])            # [B, 1, T]


# ---------------------------------- main ---------------------------------------

if __name__ == "__main__":
    cfg = dict(
        n_vocab=40,
        out_channels=8,
        hidden_channels=32,
        filter_channels=64,
        filter_channels_dp=64,   # used only by proj_w (not part of forward)
        n_heads=2,
        n_layers=2,
        kernel_size=3,
        p_dropout=0.1,           # identity at inference
    )

    key = jax.random.PRNGKey(0)
    pkey, tkey = jax.random.split(key)
    params = init_params(pkey, cfg)
    kparams = prepare_params(params, cfg)

    B, T = 2, 16
    tokens = jax.random.randint(tkey, (B, T), 0, cfg["n_vocab"], dtype=jnp.int32)
    x_lengths = jnp.array([16, 11], dtype=jnp.int32)

    fwd = jax.jit(partial(text_encoder_forward, cfg=cfg))
    x, x_m, x_logs, x_mask = fwd(kparams, tokens, x_lengths)
    jax.block_until_ready((x, x_m, x_logs, x_mask))

    assert x.shape == (B, cfg["hidden_channels"], T)
    assert x_m.shape == (B, cfg["out_channels"], T)
    assert x_logs.shape == (B, cfg["out_channels"], T)
    assert x_mask.shape == (B, 1, T)
    assert bool(jnp.all(jnp.isfinite(x))) and bool(jnp.all(jnp.isfinite(x_m)))
    assert bool(jnp.all(jnp.isfinite(x_logs)))

    print("KERNEL_OK")
</pallas_src>

<mosaic_0001>
module attributes {stable_mosaic.version = 11 : i64} {
  func.func @_text_encoder_kernel(%arg0: i32, %arg1: memref<2xi32, #tpu.memory_space<smem>>, %arg2: memref<32x32xf32, #tpu.memory_space<vmem>>, %arg3: memref<1x32x96xbf16, #tpu.memory_space<vmem>>, %arg4: memref<1x1x96xf32, #tpu.memory_space<vmem>>, %arg5: memref<1x32x32xbf16, #tpu.memory_space<vmem>>, %arg6: memref<1x1x32xf32, #tpu.memory_space<vmem>>, %arg7: memref<1x1x32xf32, #tpu.memory_space<vmem>>, %arg8: memref<1x1x32xf32, #tpu.memory_space<vmem>>, %arg9: memref<1x96x64xbf16, #tpu.memory_space<vmem>>, %arg10: memref<1x1x64xf32, #tpu.memory_space<vmem>>, %arg11: memref<1x192x32xbf16, #tpu.memory_space<vmem>>, %arg12: memref<1x1x32xf32, #tpu.memory_space<vmem>>, %arg13: memref<1x1x32xf32, #tpu.memory_space<vmem>>, %arg14: memref<1x1x32xf32, #tpu.memory_space<vmem>>, %arg15: memref<32x16xbf16, #tpu.memory_space<vmem>>, %arg16: memref<1x16xf32, #tpu.memory_space<vmem>>, %arg17: memref<32x32xf32, #tpu.memory_space<vmem>>, %arg18: memref<32x16xf32, #tpu.memory_space<vmem>>, %arg19: memref<32x32xf32, #tpu.memory_space<vmem>>) attributes {dimension_semantics = [#tpu.dimension_semantics<arbitrary>], iteration_bounds = array<i64: 2>, scalar_prefetch = 1 : i64, scratch_operands = 1 : i64, tpu.core_type = #tpu.core_type<tc>, window_params = [{pipeline_mode = #tpu.pipeline_mode<synchronous>, transform_indices = @transform_0, window_bounds = array<i64: 32, 32>}, {transform_indices = @transform_1, window_bounds = array<i64: 1, 32, 96>}, {transform_indices = @transform_2, window_bounds = array<i64: 1, 1, 96>}, {transform_indices = @transform_3, window_bounds = array<i64: 1, 32, 32>}, {transform_indices = @transform_4, window_bounds = array<i64: 1, 1, 32>}, {transform_indices = @transform_5, window_bounds = array<i64: 1, 1, 32>}, {transform_indices = @transform_6, window_bounds = array<i64: 1, 1, 32>}, {transform_indices = @transform_7, window_bounds = array<i64: 1, 96, 64>}, {transform_indices = @transform_8, window_bounds = array<i64: 1, 1, 64>}, {transform_indices = @transform_9, window_bounds = array<i64: 1, 192, 32>}, {transform_indices = @transform_10, window_bounds = array<i64: 1, 1, 32>}, {transform_indices = @transform_11, window_bounds = array<i64: 1, 1, 32>}, {transform_indices = @transform_12, window_bounds = array<i64: 1, 1, 32>}, {pipeline_mode = #tpu.pipeline_mode<synchronous>, transform_indices = @transform_13, window_bounds = array<i64: 32, 16>}, {pipeline_mode = #tpu.pipeline_mode<synchronous>, transform_indices = @transform_14, window_bounds = array<i64: 1, 16>}, {pipeline_mode = #tpu.pipeline_mode<synchronous>, transform_indices = @transform_15, window_bounds = array<i64: 32, 32>}, {pipeline_mode = #tpu.pipeline_mode<synchronous>, transform_indices = @transform_16, window_bounds = array<i64: 32, 16>}]} {
    %c0_i32 = arith.constant 0 : i32
    %0 = arith.cmpi eq, %arg0, %c0_i32 : i32
    %1 = arith.extui %0 : i1 to i32
    %c0_i32_0 = arith.constant 0 : i32
    %2 = arith.cmpi ne, %1, %c0_i32_0 : i32
    scf.if %2 {
      %c0_94 = arith.constant 0 : index
      %c0_95 = arith.constant 0 : index
      %290 = vector.load %arg2[%c0_94, %c0_95] : memref<32x32xf32, #tpu.memory_space<vmem>>, vector<32x32xf32>
      %c0_96 = arith.constant 0 : index
      %c0_97 = arith.constant 0 : index
      %291 = vector.load %arg19[%c0_96, %c0_97] : memref<32x32xf32, #tpu.memory_space<vmem>>, vector<32x32xf32>
      tpu.vector_store %arg19[%c0_96, %c0_97], %290 {strides = array<i32>} : memref<32x32xf32, #tpu.memory_space<vmem>>, vector<32x32xf32>,
    } else {
    }
    %3 = tpu.iota {dimensions = array<i32: 0>} : vector<32x1xi32>
    %c16_i32 = arith.constant 16 : i32
    %4 = vector.broadcast %c16_i32 : i32 to vector<32x1xi32>
    %5 = arith.cmpi sge, %3, %4 : vector<32x1xi32>
    %c16_i32_1 = arith.constant 16 : i32
    %6 = vector.broadcast %c16_i32_1 : i32 to vector<32x1xi32>
    %7 = arith.subi %3, %6 : vector<32x1xi32>
    %8 = arith.select %5, %7, %3 : vector<32x1xi1>, vector<32x1xi32>
    %cst = arith.constant 0.000000e+00 : f32
    %9 = vector.broadcast %cst : f32 to vector<32x1xf32>
    %10 = tpu.iota {dimensions = array<i32: 1>} : vector<16x16xi32>
    %11 = tpu.iota {dimensions = array<i32: 0>} : vector<16x16xi32>
    %c0 = arith.constant 0 : index
    %12 = memref.load %arg1[%c0] : memref<2xi32, #tpu.memory_space<smem>>
    %c0_i32_2 = arith.constant 0 : i32
    %13 = vector.broadcast %c0_i32_2 : i32 to vector<32x1xi32>
    %14 = arith.cmpi sge, %3, %13 : vector<32x1xi32>
    %c0_i32_3 = arith.constant 0 : i32
    %15 = arith.addi %c0_i32_3, %12 : i32
    %16 = vector.broadcast %15 : i32 to vector<32x1xi32>
    %17 = arith.cmpi slt, %3, %16 : vector<32x1xi32>
    %18 = arith.andi %14, %17 : vector<32x1xi1>
    %cst_4 = arith.constant 1.000000e+00 : f32
    %19 = vector.broadcast %cst_4 : f32 to vector<32x1xf32>
    %20 = arith.select %18, %19, %9 : vector<32x1xi1>, vector<32x1xf32>
    %21 = vector.broadcast %12 : i32 to vector<16x16xi32>
    %22 = arith.cmpi slt, %10, %21 : vector<16x16xi32>
    %23 = vector.broadcast %12 : i32 to vector<16x16xi32>
    %24 = arith.cmpi slt, %11, %23 : vector<16x16xi32>
    %25 = arith.andi %22, %24 : vector<16x16xi1>
    %cst_5 = arith.constant 0.000000e+00 : f32
    %cst_6 = arith.constant -1.000000e+04 : f32
    %26 = vector.broadcast %cst_5 : f32 to vector<16x16xf32>
    %27 = vector.broadcast %cst_6 : f32 to vector<16x16xf32>
    %28 = arith.select %25, %26, %27 : vector<16x16xi1>, vector<16x16xf32>
    %c1 = arith.constant 1 : index
    %29 = memref.load %arg1[%c1] : memref<2xi32, #tpu.memory_space<smem>>
    %c16_i32_7 = arith.constant 16 : i32
    %30 = vector.broadcast %c16_i32_7 : i32 to vector<32x1xi32>
    %31 = arith.cmpi sge, %3, %30 : vector<32x1xi32>
    %c16_i32_8 = arith.constant 16 : i32
    %32 = arith.addi %c16_i32_8, %29 : i32
    %33 = vector.broadcast %32 : i32 to vector<32x1xi32>
    %34 = arith.cmpi slt, %3, %33 : vector<32x1xi32>
    %35 = arith.andi %31, %34 : vector<32x1xi1>
    %cst_9 = arith.constant 1.000000e+00 : f32
    %36 = vector.broadcast %cst_9 : f32 to vector<32x1xf32>
    %37 = arith.select %35, %36, %20 : vector<32x1xi1>, vector<32x1xf32>
    %38 = vector.broadcast %29 : i32 to vector<16x16xi32>
    %39 = arith.cmpi slt, %10, %38 : vector<16x16xi32>
    %40 = vector.broadcast %29 : i32 to vector<16x16xi32>
    %41 = arith.cmpi slt, %11, %40 : vector<16x16xi32>
    %42 = arith.andi %39, %41 : vector<16x16xi1>
    %cst_10 = arith.constant 0.000000e+00 : f32
    %cst_11 = arith.constant -1.000000e+04 : f32
    %43 = vector.broadcast %cst_10 : f32 to vector<16x16xf32>
    %44 = vector.broadcast %cst_11 : f32 to vector<16x16xf32>
    %45 = arith.select %42, %43, %44 : vector<16x16xi1>, vector<16x16xf32>
    %c0_12 = arith.constant 0 : index
    %c0_13 = arith.constant 0 : index
    %46 = vector.load %arg19[%c0_12, %c0_13] : memref<32x32xf32, #tpu.memory_space<vmem>>, vector<32x32xf32>
    %47 = vector.broadcast %37 : vector<32x1xf32> to vector<32x32xf32>
    %48 = arith.mulf %46, %47 : vector<32x32xf32>
    %49 = arith.truncf %48 : vector<32x32xf32> to vector<32x32xbf16>
    %c0_14 = arith.constant 0 : index
    %c0_15 = arith.constant 0 : index
    %c0_16 = arith.constant 0 : index
    %50 = vector.load %arg3[%c0_14, %c0_15, %c0_16] : memref<1x32x96xbf16, #tpu.memory_space<vmem>>, vector<1x32x96xbf16>
    %51 = vector.shape_cast %50 : vector<1x32x96xbf16> to vector<32x96xbf16>
    %cst_17 = arith.constant dense<0.000000e+00> : vector<32x96xf32>
    %52 = tpu.matmul %49, %51, %cst_17 {dimension_numbers = #tpu.dot_dimension_numbers<[1], [0], [0], [1], [0, 0, 1, 1], [], []>} : vector<32x32xbf16>, vector<32x96xbf16>, vector<32x96xf32> -> vector<32x96xf32>
    %c0_18 = arith.constant 0 : index
    %c0_19 = arith.constant 0 : index
    %c0_20 = arith.constant 0 : index
    %53 = vector.load %arg4[%c0_18, %c0_19, %c0_20] : memref<1x1x96xf32, #tpu.memory_space<vmem>>, vector<1x1x96xf32>
    %54 = vector.shape_cast %53 : vector<1x1x96xf32> to vector<1x96xf32>
    %55 = vector.broadcast %54 : vector<1x96xf32> to vector<32x96xf32>
    %56 = arith.addf %52, %55 : vector<32x96xf32>
    %57 = vector.extract_strided_slice %56 {offsets = [0, 0], sizes = [16, 96], strides = [1, 1]} : vector<32x96xf32> to vector<16x96xf32>
    %58 = vector.extract_strided_slice %57 {offsets = [0, 0], sizes = [16, 16], strides = [1, 1]} : vector<16x96xf32> to vector<16x16xf32>
    %59 = vector.extract_strided_slice %57 {offsets = [0, 16], sizes = [16, 16], strides = [1, 1]} : vector<16x96xf32> to vector<16x16xf32>
    %60 = vector.shape_cast %58 : vector<16x16xf32> to vector<1x16x16xf32>
    %61 = vector.shape_cast %59 : vector<16x16xf32> to vector<1x16x16xf32>
    %62 = tpu.concatenate %60, %61 in 0 : vector<1x16x16xf32>, vector<1x16x16xf32> -> vector<2x16x16xf32>
    %63 = vector.extract_strided_slice %57 {offsets = [0, 32], sizes = [16, 16], strides = [1, 1]} : vector<16x96xf32> to vector<16x16xf32>
    %64 = vector.extract_strided_slice %57 {offsets = [0, 48], sizes = [16, 16], strides = [1, 1]} : vector<16x96xf32> to vector<16x16xf32>
    %65 = vector.shape_cast %63 : vector<16x16xf32> to vector<1x16x16xf32>
    %66 = vector.shape_cast %64 : vector<16x16xf32> to vector<1x16x16xf32>
    %67 = tpu.concatenate %65, %66 in 0 : vector<1x16x16xf32>, vector<1x16x16xf32> -> vector<2x16x16xf32>
    %68 = vector.extract_strided_slice %57 {offsets = [0, 64], sizes = [16, 16], strides = [1, 1]} : vector<16x96xf32> to vector<16x16xf32>
    %69 = vector.extract_strided_slice %57 {offsets = [0, 80], sizes = [16, 16], strides = [1, 1]} : vector<16x96xf32> to vector<16x16xf32>
    %70 = vector.shape_cast %68 : vector<16x16xf32> to vector<1x16x16xf32>
    %71 = vector.shape_cast %69 : vector<16x16xf32> to vector<1x16x16xf32>
    %72 = tpu.concatenate %70, %71 in 0 : vector<1x16x16xf32>, vector<1x16x16xf32> -> vector<2x16x16xf32>
    %73 = arith.truncf %62 : vector<2x16x16xf32> to vector<2x16x16xbf16>
    %74 = arith.truncf %67 : vector<2x16x16xf32> to vector<2x16x16xbf16>
    "tpu.trace_start"() <{level = 10 : i32, message = "htd,hsd->hts"}> : () -> ()
    %cst_21 = arith.constant dense<0.000000e+00> : vector<2x16x16xf32>
    %75 = tpu.matmul %73, %74, %cst_21 {dimension_numbers = #tpu.dot_dimension_numbers<[2], [2], [1], [1], [0, 0, 0, 1, 1, 1], [0], [0]>} : vector<2x16x16xbf16>, vector<2x16x16xbf16>, vector<2x16x16xf32> -> vector<2x16x16xf32>
    "tpu.trace_stop"() : () -> ()
    %76 = vector.shape_cast %28 : vector<16x16xf32> to vector<1x16x16xf32>
    %77 = vector.broadcast %76 : vector<1x16x16xf32> to vector<2x16x16xf32>
    %78 = arith.addf %75, %77 : vector<2x16x16xf32>
    %cst_22 = arith.constant dense<0xFF800000> : vector<2x16xf32>
    %79 = vector.multi_reduction <maximumf>, %78, %cst_22 [2] : vector<2x16x16xf32> to vector<2x16xf32>
    %80 = vector.shape_cast %79 : vector<2x16xf32> to vector<2x16x1xf32>
    %81 = vector.broadcast %80 : vector<2x16x1xf32> to vector<2x16x16xf32>
    %82 = arith.subf %78, %81 : vector<2x16x16xf32>
    %83 = math.exp %82 : vector<2x16x16xf32>
    %cst_23 = arith.constant dense<0.000000e+00> : vector<2x16xf32>
    %84 = vector.multi_reduction <add>, %83, %cst_23 [2] : vector<2x16x16xf32> to vector<2x16xf32>
    %85 = vector.shape_cast %84 : vector<2x16xf32> to vector<2x16x1xf32>
    %86 = tpu.reciprocal %85 {approx = true} : vector<2x16x1xf32> -> vector<2x16x1xf32>
    %87 = vector.broadcast %86 : vector<2x16x1xf32> to vector<2x16x16xf32>
    %88 = arith.mulf %83, %87 : vector<2x16x16xf32>
    %89 = arith.truncf %88 : vector<2x16x16xf32> to vector<2x16x16xbf16>
    %90 = arith.truncf %72 : vector<2x16x16xf32> to vector<2x16x16xbf16>
    "tpu.trace_start"() <{level = 10 : i32, message = "hts,hsd->htd"}> : () -> ()
    %cst_24 = arith.constant dense<0.000000e+00> : vector<2x16x16xf32>
    %91 = tpu.matmul %89, %90, %cst_24 {dimension_numbers = #tpu.dot_dimension_numbers<[2], [1], [1], [2], [0, 0, 0, 1, 1, 2], [0], [0]>} : vector<2x16x16xbf16>, vector<2x16x16xbf16>, vector<2x16x16xf32> -> vector<2x16x16xf32>
    "tpu.trace_stop"() : () -> ()
    %92 = vector.extract_strided_slice %91 {offsets = [0, 0, 0], sizes = [1, 16, 16], strides = [1, 1, 1]} : vector<2x16x16xf32> to vector<1x16x16xf32>
    %93 = vector.shape_cast %92 : vector<1x16x16xf32> to vector<16x16xf32>
    %94 = vector.extract_strided_slice %91 {offsets = [1, 0, 0], sizes = [1, 16, 16], strides = [1, 1, 1]} : vector<2x16x16xf32> to vector<1x16x16xf32>
    %95 = vector.shape_cast %94 : vector<1x16x16xf32> to vector<16x16xf32>
    %96 = tpu.concatenate %93, %95 in 1 : vector<16x16xf32>, vector<16x16xf32> -> vector<16x32xf32>
    %97 = vector.extract_strided_slice %56 {offsets = [16, 0], sizes = [16, 96], strides = [1, 1]} : vector<32x96xf32> to vector<16x96xf32>
    %98 = vector.extract_strided_slice %97 {offsets = [0, 0], sizes = [16, 16], strides = [1, 1]} : vector<16x96xf32> to vector<16x16xf32>
    %99 = vector.extract_strided_slice %97 {offsets = [0, 16], sizes = [16, 16], strides = [1, 1]} : vector<16x96xf32> to vector<16x16xf32>
    %100 = vector.shape_cast %98 : vector<16x16xf32> to vector<1x16x16xf32>
    %101 = vector.shape_cast %99 : vector<16x16xf32> to vector<1x16x16xf32>
    %102 = tpu.concatenate %100, %101 in 0 : vector<1x16x16xf32>, vector<1x16x16xf32> -> vector<2x16x16xf32>
    %103 = vector.extract_strided_slice %97 {offsets = [0, 32], sizes = [16, 16], strides = [1, 1]} : vector<16x96xf32> to vector<16x16xf32>
    %104 = vector.extract_strided_slice %97 {offsets = [0, 48], sizes = [16, 16], strides = [1, 1]} : vector<16x96xf32> to vector<16x16xf32>
    %105 = vector.shape_cast %103 : vector<16x16xf32> to vector<1x16x16xf32>
    %106 = vector.shape_cast %104 : vector<16x16xf32> to vector<1x16x16xf32>
    %107 = tpu.concatenate %105, %106 in 0 : vector<1x16x16xf32>, vector<1x16x16xf32> -> vector<2x16x16xf32>
    %108 = vector.extract_strided_slice %97 {offsets = [0, 64], sizes = [16, 16], strides = [1, 1]} : vector<16x96xf32> to vector<16x16xf32>
    %109 = vector.extract_strided_slice %97 {offsets = [0, 80], sizes = [16, 16], strides = [1, 1]} : vector<16x96xf32> to vector<16x16xf32>
    %110 = vector.shape_cast %108 : vector<16x16xf32> to vector<1x16x16xf32>
    %111 = vector.shape_cast %109 : vector<16x16xf32> to vector<1x16x16xf32>
    %112 = tpu.concatenate %110, %111 in 0 : vector<1x16x16xf32>, vector<1x16x16xf32> -> vector<2x16x16xf32>
    %113 = arith.truncf %102 : vector<2x16x16xf32> to vector<2x16x16xbf16>
    %114 = arith.truncf %107 : vector<2x16x16xf32> to vector<2x16x16xbf16>
    "tpu.trace_start"() <{level = 10 : i32, message = "htd,hsd->hts"}> : () -> ()
    %cst_25 = arith.constant dense<0.000000e+00> : vector<2x16x16xf32>
    %115 = tpu.matmul %113, %114, %cst_25 {dimension_numbers = #tpu.dot_dimension_numbers<[2], [2], [1], [1], [0, 0, 0, 1, 1, 1], [0], [0]>} : vector<2x16x16xbf16>, vector<2x16x16xbf16>, vector<2x16x16xf32> -> vector<2x16x16xf32>
    "tpu.trace_stop"() : () -> ()
    %116 = vector.shape_cast %45 : vector<16x16xf32> to vector<1x16x16xf32>
    %117 = vector.broadcast %116 : vector<1x16x16xf32> to vector<2x16x16xf32>
    %118 = arith.addf %115, %117 : vector<2x16x16xf32>
    %cst_26 = arith.constant dense<0xFF800000> : vector<2x16xf32>
    %119 = vector.multi_reduction <maximumf>, %118, %cst_26 [2] : vector<2x16x16xf32> to vector<2x16xf32>
    %120 = vector.shape_cast %119 : vector<2x16xf32> to vector<2x16x1xf32>
    %121 = vector.broadcast %120 : vector<2x16x1xf32> to vector<2x16x16xf32>
    %122 = arith.subf %118, %121 : vector<2x16x16xf32>
    %123 = math.exp %122 : vector<2x16x16xf32>
    %cst_27 = arith.constant dense<0.000000e+00> : vector<2x16xf32>
    %124 = vector.multi_reduction <add>, %123, %cst_27 [2] : vector<2x16x16xf32> to vector<2x16xf32>
    %125 = vector.shape_cast %124 : vector<2x16xf32> to vector<2x16x1xf32>
    %126 = tpu.reciprocal %125 {approx = true} : vector<2x16x1xf32> -> vector<2x16x1xf32>
    %127 = vector.broadcast %126 : vector<2x16x1xf32> to vector<2x16x16xf32>
    %128 = arith.mulf %123, %127 : vector<2x16x16xf32>
    %129 = arith.truncf %128 : vector<2x16x16xf32> to vector<2x16x16xbf16>
    %130 = arith.truncf %112 : vector<2x16x16xf32> to vector<2x16x16xbf16>
    "tpu.trace_start"() <{level = 10 : i32, message = "hts,hsd->htd"}> : () -> ()
    %cst_28 = arith.constant dense<0.000000e+00> : vector<2x16x16xf32>
    %131 = tpu.matmul %129, %130, %cst_28 {dimension_numbers = #tpu.dot_dimension_numbers<[2], [1], [1], [2], [0, 0, 0, 1, 1, 2], [0], [0]>} : vector<2x16x16xbf16>, vector<2x16x16xbf16>, vector<2x16x16xf32> -> vector<2x16x16xf32>
    "tpu.trace_stop"() : () -> ()
    %132 = vector.extract_strided_slice %131 {offsets = [0, 0, 0], sizes = [1, 16, 16], strides = [1, 1, 1]} : vector<2x16x16xf32> to vector<1x16x16xf32>
    %133 = vector.shape_cast %132 : vector<1x16x16xf32> to vector<16x16xf32>
    %134 = vector.extract_strided_slice %131 {offsets = [1, 0, 0], sizes = [1, 16, 16], strides = [1, 1, 1]} : vector<2x16x16xf32> to vector<1x16x16xf32>
    %135 = vector.shape_cast %134 : vector<1x16x16xf32> to vector<16x16xf32>
    %136 = tpu.concatenate %133, %135 in 1 : vector<16x16xf32>, vector<16x16xf32> -> vector<16x32xf32>
    %137 = tpu.concatenate %96, %136 in 0 : vector<16x32xf32>, vector<16x32xf32> -> vector<32x32xf32>
    %138 = arith.truncf %137 : vector<32x32xf32> to vector<32x32xbf16>
    %c0_29 = arith.constant 0 : index
    %c0_30 = arith.constant 0 : index
    %c0_31 = arith.constant 0 : index
    %139 = vector.load %arg5[%c0_29, %c0_30, %c0_31] : memref<1x32x32xbf16, #tpu.memory_space<vmem>>, vector<1x32x32xbf16>
    %140 = vector.shape_cast %139 : vector<1x32x32xbf16> to vector<32x32xbf16>
    %cst_32 = arith.constant dense<0.000000e+00> : vector<32x32xf32>
    %141 = tpu.matmul %138, %140, %cst_32 {dimension_numbers = #tpu.dot_dimension_numbers<[1], [0], [0], [1], [0, 0, 1, 1], [], []>} : vector<32x32xbf16>, vector<32x32xbf16>, vector<32x32xf32> -> vector<32x32xf32>
    %c0_33 = arith.constant 0 : index
    %c0_34 = arith.constant 0 : index
    %c0_35 = arith.constant 0 : index
    %142 = vector.load %arg6[%c0_33, %c0_34, %c0_35] : memref<1x1x32xf32, #tpu.memory_space<vmem>>, vector<1x1x32xf32>
    %143 = vector.shape_cast %142 : vector<1x1x32xf32> to vector<1x32xf32>
    %144 = vector.broadcast %143 : vector<1x32xf32> to vector<32x32xf32>
    %145 = arith.addf %141, %144 : vector<32x32xf32>
    %146 = arith.addf %48, %145 : vector<32x32xf32>
    %c0_36 = arith.constant 0 : index
    %c0_37 = arith.constant 0 : index
    %c0_38 = arith.constant 0 : index
    %147 = vector.load %arg7[%c0_36, %c0_37, %c0_38] : memref<1x1x32xf32, #tpu.memory_space<vmem>>, vector<1x1x32xf32>
    %148 = vector.shape_cast %147 : vector<1x1x32xf32> to vector<1x32xf32>
    %c0_39 = arith.constant 0 : index
    %c0_40 = arith.constant 0 : index
    %c0_41 = arith.constant 0 : index
    %149 = vector.load %arg8[%c0_39, %c0_40, %c0_41] : memref<1x1x32xf32, #tpu.memory_space<vmem>>, vector<1x1x32xf32>
    %150 = vector.shape_cast %149 : vector<1x1x32xf32> to vector<1x32xf32>
    %cst_42 = arith.constant dense<0.000000e+00> : vector<32xf32>
    %151 = vector.multi_reduction <add>, %146, %cst_42 [1] : vector<32x32xf32> to vector<32xf32>
    %152 = vector.shape_cast %151 : vector<32xf32> to vector<32x1xf32>
    %cst_43 = arith.constant 3.200000e+01 : f32
    %153 = vector.broadcast %cst_43 : f32 to vector<32x1xf32>
    %154 = arith.divf %152, %153 : vector<32x1xf32>
    %155 = vector.broadcast %154 : vector<32x1xf32> to vector<32x32xf32>
    %156 = arith.subf %146, %155 : vector<32x32xf32>
    %157 = arith.mulf %156, %156 : vector<32x32xf32>
    %cst_44 = arith.constant dense<0.000000e+00> : vector<32xf32>
    %158 = vector.multi_reduction <add>, %157, %cst_44 [1] : vector<32x32xf32> to vector<32xf32>
    %159 = vector.shape_cast %158 : vector<32xf32> to vector<32x1xf32>
    %cst_45 = arith.constant 3.200000e+01 : f32
    %160 = vector.broadcast %cst_45 : f32 to vector<32x1xf32>
    %161 = arith.divf %159, %160 : vector<32x1xf32>
    %162 = vector.broadcast %154 : vector<32x1xf32> to vector<32x32xf32>
    %163 = arith.subf %146, %162 : vector<32x32xf32>
    %cst_46 = arith.constant 9.99999974E-5 : f32
    %164 = vector.broadcast %cst_46 : f32 to vector<32x1xf32>
    %165 = arith.addf %161, %164 : vector<32x1xf32>
    %166 = math.rsqrt %165 : vector<32x1xf32>
    %167 = vector.broadcast %166 : vector<32x1xf32> to vector<32x32xf32>
    %168 = arith.mulf %163, %167 : vector<32x32xf32>
    %169 = vector.broadcast %148 : vector<1x32xf32> to vector<32x32xf32>
    %170 = arith.mulf %168, %169 : vector<32x32xf32>
    %171 = vector.broadcast %150 : vector<1x32xf32> to vector<32x32xf32>
    %172 = arith.addf %170, %171 : vector<32x32xf32>
    %173 = vector.broadcast %37 : vector<32x1xf32> to vector<32x32xf32>
    %174 = arith.mulf %172, %173 : vector<32x32xf32>
    %c0_47 = arith.constant 0 : index
    %c0_48 = arith.constant 0 : index
    %c0_49 = arith.constant 0 : index
    %175 = vector.load %arg9[%c0_47, %c0_48, %c0_49] : memref<1x96x64xbf16, #tpu.memory_space<vmem>>, vector<1x96x64xbf16>
    %176 = vector.shape_cast %175 : vector<1x96x64xbf16> to vector<96x64xbf16>
    %c0_50 = arith.constant 0 : index
    %c0_51 = arith.constant 0 : index
    %c0_52 = arith.constant 0 : index
    %177 = vector.load %arg10[%c0_50, %c0_51, %c0_52] : memref<1x1x64xf32, #tpu.memory_space<vmem>>, vector<1x1x64xf32>
    %178 = vector.shape_cast %177 : vector<1x1x64xf32> to vector<1x64xf32>
    %c1_i32 = arith.constant 1 : i32
    %179 = tpu.dynamic_rotate %174 by %c1_i32 dim 0 : vector<32x32xf32>, i32 -> vector<32x32xf32>
    %c-1_i32 = arith.constant -1 : i32
    %180 = vector.broadcast %c-1_i32 : i32 to vector<32x1xi32>
    %181 = arith.addi %8, %180 : vector<32x1xi32>
    %c0_i32_53 = arith.constant 0 : i32
    %182 = vector.broadcast %c0_i32_53 : i32 to vector<32x1xi32>
    %183 = arith.cmpi sge, %181, %182 : vector<32x1xi32>
    %c-1_i32_54 = arith.constant -1 : i32
    %184 = vector.broadcast %c-1_i32_54 : i32 to vector<32x1xi32>
    %185 = arith.addi %8, %184 : vector<32x1xi32>
    %c16_i32_55 = arith.constant 16 : i32
    %186 = vector.broadcast %c16_i32_55 : i32 to vector<32x1xi32>
    %187 = arith.cmpi slt, %185, %186 : vector<32x1xi32>
    %188 = arith.andi %183, %187 : vector<32x1xi1>
    %189 = arith.extui %188 : vector<32x1xi1> to vector<32x1xi32>
    %190 = arith.sitofp %189 : vector<32x1xi32> to vector<32x1xf32>
    %191 = vector.broadcast %190 : vector<32x1xf32> to vector<32x32xf32>
    %192 = arith.mulf %179, %191 : vector<32x32xf32>
    %193 = arith.truncf %192 : vector<32x32xf32> to vector<32x32xbf16>
    %194 = arith.truncf %174 : vector<32x32xf32> to vector<32x32xbf16>
    %c31_i32 = arith.constant 31 : i32
    %195 = tpu.dynamic_rotate %174 by %c31_i32 dim 0 : vector<32x32xf32>, i32 -> vector<32x32xf32>
    %c1_i32_56 = arith.constant 1 : i32
    %196 = vector.broadcast %c1_i32_56 : i32 to vector<32x1xi32>
    %197 = arith.addi %8, %196 : vector<32x1xi32>
    %c0_i32_57 = arith.constant 0 : i32
    %198 = vector.broadcast %c0_i32_57 : i32 to vector<32x1xi32>
    %199 = arith.cmpi sge, %197, %198 : vector<32x1xi32>
    %c1_i32_58 = arith.constant 1 : i32
    %200 = vector.broadcast %c1_i32_58 : i32 to vector<32x1xi32>
    %201 = arith.addi %8, %200 : vector<32x1xi32>
    %c16_i32_59 = arith.constant 16 : i32
    %202 = vector.broadcast %c16_i32_59 : i32 to vector<32x1xi32>
    %203 = arith.cmpi slt, %201, %202 : vector<32x1xi32>
    %204 = arith.andi %199, %203 : vector<32x1xi1>
    %205 = arith.extui %204 : vector<32x1xi1> to vector<32x1xi32>
    %206 = arith.sitofp %205 : vector<32x1xi32> to vector<32x1xf32>
    %207 = vector.broadcast %206 : vector<32x1xf32> to vector<32x32xf32>
    %208 = arith.mulf %195, %207 : vector<32x32xf32>
    %209 = arith.truncf %208 : vector<32x32xf32> to vector<32x32xbf16>
    %210 = tpu.concatenate %193, %194, %209 in 1 : vector<32x32xbf16>, vector<32x32xbf16>, vector<32x32xbf16> -> vector<32x96xbf16>
    %cst_60 = arith.constant dense<0.000000e+00> : vector<32x64xf32>
    %211 = tpu.matmul %210, %176, %cst_60 {dimension_numbers = #tpu.dot_dimension_numbers<[1], [0], [0], [1], [0, 0, 1, 1], [], []>} : vector<32x96xbf16>, vector<96x64xbf16>, vector<32x64xf32> -> vector<32x64xf32>
    %212 = vector.broadcast %178 : vector<1x64xf32> to vector<32x64xf32>
    %213 = arith.addf %211, %212 : vector<32x64xf32>
    %cst_61 = arith.constant 0.000000e+00 : f32
    %214 = vector.broadcast %cst_61 : f32 to vector<32x64xf32>
    %215 = arith.maximumf %213, %214 : vector<32x64xf32>
    %216 = vector.broadcast %37 : vector<32x1xf32> to vector<32x64xf32>
    %217 = arith.mulf %215, %216 : vector<32x64xf32>
    %c0_62 = arith.constant 0 : index
    %c0_63 = arith.constant 0 : index
    %c0_64 = arith.constant 0 : index
    %218 = vector.load %arg11[%c0_62, %c0_63, %c0_64] : memref<1x192x32xbf16, #tpu.memory_space<vmem>>, vector<1x192x32xbf16>
    %219 = vector.shape_cast %218 : vector<1x192x32xbf16> to vector<192x32xbf16>
    %c0_65 = arith.constant 0 : index
    %c0_66 = arith.constant 0 : index
    %c0_67 = arith.constant 0 : index
    %220 = vector.load %arg12[%c0_65, %c0_66, %c0_67] : memref<1x1x32xf32, #tpu.memory_space<vmem>>, vector<1x1x32xf32>
    %221 = vector.shape_cast %220 : vector<1x1x32xf32> to vector<1x32xf32>
    %c1_i32_68 = arith.constant 1 : i32
    %222 = tpu.dynamic_rotate %217 by %c1_i32_68 dim 0 : vector<32x64xf32>, i32 -> vector<32x64xf32>
    %c-1_i32_69 = arith.constant -1 : i32
    %223 = vector.broadcast %c-1_i32_69 : i32 to vector<32x1xi32>
    %224 = arith.addi %8, %223 : vector<32x1xi32>
    %c0_i32_70 = arith.constant 0 : i32
    %225 = vector.broadcast %c0_i32_70 : i32 to vector<32x1xi32>
    %226 = arith.cmpi sge, %224, %225 : vector<32x1xi32>
    %c-1_i32_71 = arith.constant -1 : i32
    %227 = vector.broadcast %c-1_i32_71 : i32 to vector<32x1xi32>
    %228 = arith.addi %8, %227 : vector<32x1xi32>
    %c16_i32_72 = arith.constant 16 : i32
    %229 = vector.broadcast %c16_i32_72 : i32 to vector<32x1xi32>
    %230 = arith.cmpi slt, %228, %229 : vector<32x1xi32>
    %231 = arith.andi %226, %230 : vector<32x1xi1>
    %232 = arith.extui %231 : vector<32x1xi1> to vector<32x1xi32>
    %233 = arith.sitofp %232 : vector<32x1xi32> to vector<32x1xf32>
    %234 = vector.broadcast %233 : vector<32x1xf32> to vector<32x64xf32>
    %235 = arith.mulf %222, %234 : vector<32x64xf32>
    %236 = arith.truncf %235 : vector<32x64xf32> to vector<32x64xbf16>
    %237 = arith.truncf %217 : vector<32x64xf32> to vector<32x64xbf16>
    %c31_i32_73 = arith.constant 31 : i32
    %238 = tpu.dynamic_rotate %217 by %c31_i32_73 dim 0 : vector<32x64xf32>, i32 -> vector<32x64xf32>
    %c1_i32_74 = arith.constant 1 : i32
    %239 = vector.broadcast %c1_i32_74 : i32 to vector<32x1xi32>
    %240 = arith.addi %8, %239 : vector<32x1xi32>
    %c0_i32_75 = arith.constant 0 : i32
    %241 = vector.broadcast %c0_i32_75 : i32 to vector<32x1xi32>
    %242 = arith.cmpi sge, %240, %241 : vector<32x1xi32>
    %c1_i32_76 = arith.constant 1 : i32
    %243 = vector.broadcast %c1_i32_76 : i32 to vector<32x1xi32>
    %244 = arith.addi %8, %243 : vector<32x1xi32>
    %c16_i32_77 = arith.constant 16 : i32
    %245 = vector.broadcast %c16_i32_77 : i32 to vector<32x1xi32>
    %246 = arith.cmpi slt, %244, %245 : vector<32x1xi32>
    %247 = arith.andi %242, %246 : vector<32x1xi1>
    %248 = arith.extui %247 : vector<32x1xi1> to vector<32x1xi32>
    %249 = arith.sitofp %248 : vector<32x1xi32> to vector<32x1xf32>
    %250 = vector.broadcast %249 : vector<32x1xf32> to vector<32x64xf32>
    %251 = arith.mulf %238, %250 : vector<32x64xf32>
    %252 = arith.truncf %251 : vector<32x64xf32> to vector<32x64xbf16>
    %253 = tpu.concatenate %236, %237, %252 in 1 : vector<32x64xbf16>, vector<32x64xbf16>, vector<32x64xbf16> -> vector<32x192xbf16>
    %cst_78 = arith.constant dense<0.000000e+00> : vector<32x32xf32>
    %254 = tpu.matmul %253, %219, %cst_78 {dimension_numbers = #tpu.dot_dimension_numbers<[1], [0], [0], [1], [0, 0, 1, 1], [], []>} : vector<32x192xbf16>, vector<192x32xbf16>, vector<32x32xf32> -> vector<32x32xf32>
    %255 = vector.broadcast %221 : vector<1x32xf32> to vector<32x32xf32>
    %256 = arith.addf %254, %255 : vector<32x32xf32>
    %257 = vector.broadcast %37 : vector<32x1xf32> to vector<32x32xf32>
    %258 = arith.mulf %256, %257 : vector<32x32xf32>
    %259 = arith.addf %172, %258 : vector<32x32xf32>
    %c0_79 = arith.constant 0 : index
    %c0_80 = arith.constant 0 : index
    %c0_81 = arith.constant 0 : index
    %260 = vector.load %arg13[%c0_79, %c0_80, %c0_81] : memref<1x1x32xf32, #tpu.memory_space<vmem>>, vector<1x1x32xf32>
    %261 = vector.shape_cast %260 : vector<1x1x32xf32> to vector<1x32xf32>
    %c0_82 = arith.constant 0 : index
    %c0_83 = arith.constant 0 : index
    %c0_84 = arith.constant 0 : index
    %262 = vector.load %arg14[%c0_82, %c0_83, %c0_84] : memref<1x1x32xf32, #tpu.memory_space<vmem>>, vector<1x1x32xf32>
    %263 = vector.shape_cast %262 : vector<1x1x32xf32> to vector<1x32xf32>
    %cst_85 = arith.constant dense<0.000000e+00> : vector<32xf32>
    %264 = vector.multi_reduction <add>, %259, %cst_85 [1] : vector<32x32xf32> to vector<32xf32>
    %265 = vector.shape_cast %264 : vector<32xf32> to vector<32x1xf32>
    %cst_86 = arith.constant 3.200000e+01 : f32
    %266 = vector.broadcast %cst_86 : f32 to vector<32x1xf32>
    %267 = arith.divf %265, %266 : vector<32x1xf32>
    %268 = vector.broadcast %267 : vector<32x1xf32> to vector<32x32xf32>
    %269 = arith.subf %259, %268 : vector<32x32xf32>
    %270 = arith.mulf %269, %269 : vector<32x32xf32>
    %cst_87 = arith.constant dense<0.000000e+00> : vector<32xf32>
    %271 = vector.multi_reduction <add>, %270, %cst_87 [1] : vector<32x32xf32> to vector<32xf32>
    %272 = vector.shape_cast %271 : vector<32xf32> to vector<32x1xf32>
    %cst_88 = arith.constant 3.200000e+01 : f32
    %273 = vector.broadcast %cst_88 : f32 to vector<32x1xf32>
    %274 = arith.divf %272, %273 : vector<32x1xf32>
    %275 = vector.broadcast %267 : vector<32x1xf32> to vector<32x32xf32>
    %276 = arith.subf %259, %275 : vector<32x32xf32>
    %cst_89 = arith.constant 9.99999974E-5 : f32
    %277 = vector.broadcast %cst_89 : f32 to vector<32x1xf32>
    %278 = arith.addf %274, %277 : vector<32x1xf32>
    %279 = math.rsqrt %278 : vector<32x1xf32>
    %280 = vector.broadcast %279 : vector<32x1xf32> to vector<32x32xf32>
    %281 = arith.mulf %276, %280 : vector<32x32xf32>
    %282 = vector.broadcast %261 : vector<1x32xf32> to vector<32x32xf32>
    %283 = arith.mulf %281, %282 : vector<32x32xf32>
    %284 = vector.broadcast %263 : vector<1x32xf32> to vector<32x32xf32>
    %285 = arith.addf %283, %284 : vector<32x32xf32>
    %c0_90 = arith.constant 0 : index
    %c0_91 = arith.constant 0 : index
    %286 = vector.load %arg19[%c0_90, %c0_91] : memref<32x32xf32, #tpu.memory_space<vmem>>, vector<32x32xf32>
    tpu.vector_store %arg19[%c0_90, %c0_91], %285 {strides = array<i32>} : memref<32x32xf32, #tpu.memory_space<vmem>>, vector<32x32xf32>,
    %c1_i32_92 = arith.constant 1 : i32
    %287 = arith.cmpi eq, %arg0, %c1_i32_92 : i32
    %288 = arith.extui %287 : i1 to i32
    %c0_i32_93 = arith.constant 0 : i32
    %289 = arith.cmpi ne, %288, %c0_i32_93 : i32
    scf.if %289 {
      %290 = vector.broadcast %37 : vector<32x1xf32> to vector<32x32xf32>
      %291 = arith.mulf %285, %290 : vector<32x32xf32>
      %c0_94 = arith.constant 0 : index
      %c0_95 = arith.constant 0 : index
      %292 = vector.load %arg17[%c0_94, %c0_95] : memref<32x32xf32, #tpu.memory_space<vmem>>, vector<32x32xf32>
      tpu.vector_store %arg17[%c0_94, %c0_95], %291 {strides = array<i32>} : memref<32x32xf32, #tpu.memory_space<vmem>>, vector<32x32xf32>,
      %293 = arith.truncf %291 : vector<32x32xf32> to vector<32x32xbf16>
      %c0_96 = arith.constant 0 : index
      %c0_97 = arith.constant 0 : index
      %294 = vector.load %arg15[%c0_96, %c0_97] : memref<32x16xbf16, #tpu.memory_space<vmem>>, vector<32x16xbf16>
      %cst_98 = arith.constant dense<0.000000e+00> : vector<32x16xf32>
      %295 = tpu.matmul %293, %294, %cst_98 {dimension_numbers = #tpu.dot_dimension_numbers<[1], [0], [0], [1], [0, 0, 1, 1], [], []>} : vector<32x32xbf16>, vector<32x16xbf16>, vector<32x16xf32> -> vector<32x16xf32>
      %c0_99 = arith.constant 0 : index
      %c0_100 = arith.constant 0 : index
      %296 = vector.load %arg16[%c0_99, %c0_100] : memref<1x16xf32, #tpu.memory_space<vmem>>, vector<1x16xf32>
      %297 = vector.broadcast %296 : vector<1x16xf32> to vector<32x16xf32>
      %298 = arith.addf %295, %297 : vector<32x16xf32>
      %299 = vector.broadcast %37 : vector<32x1xf32> to vector<32x16xf32>
      %300 = arith.mulf %298, %299 : vector<32x16xf32>
      %c0_101 = arith.constant 0 : index
      %c0_102 = arith.constant 0 : index
      %301 = vector.load %arg18[%c0_101, %c0_102] : memref<32x16xf32, #tpu.memory_space<vmem>>, vector<32x16xf32>
      tpu.vector_store %arg18[%c0_101, %c0_102], %300 {strides = array<i32>} : memref<32x16xf32, #tpu.memory_space<vmem>>, vector<32x16xf32>,
    } else {
    }
    return
  }
  func.func @transform_0(%arg0: i32, %arg1: memref<2xi32, #tpu.memory_space<smem>>) -> (i32, i32) {
    %c0_i32 = arith.constant 0 : i32
    %c0_i32_0 = arith.constant 0 : i32
    %c0_i32_1 = arith.constant 0 : i32
    return %c0_i32, %c0_i32_0 : i32, i32
  }
  func.func @transform_1(%arg0: i32, %arg1: memref<2xi32, #tpu.memory_space<smem>>) -> (i32, i32, i32) {
    %c0_i32 = arith.constant 0 : i32
    %c0_i32_0 = arith.constant 0 : i32
    %c0_i32_1 = arith.constant 0 : i32
    return %arg0, %c0_i32, %c0_i32_0 : i32, i32, i32
  }
  func.func @transform_2(%arg0: i32, %arg1: memref<2xi32, #tpu.memory_space<smem>>) -> (i32, i32, i32) {
    %c0_i32 = arith.constant 0 : i32
    %c0_i32_0 = arith.constant 0 : i32
    %c0_i32_1 = arith.constant 0 : i32
    return %arg0, %c0_i32, %c0_i32_0 : i32, i32, i32
  }
  func.func @transform_3(%arg0: i32, %arg1: memref<2xi32, #tpu.memory_space<smem>>) -> (i32, i32, i32) {
    %c0_i32 = arith.constant 0 : i32
    %c0_i32_0 = arith.constant 0 : i32
    %c0_i32_1 = arith.constant 0 : i32
    return %arg0, %c0_i32, %c0_i32_0 : i32, i32, i32
  }
  func.func @transform_4(%arg0: i32, %arg1: memref<2xi32, #tpu.memory_space<smem>>) -> (i32, i32, i32) {
    %c0_i32 = arith.constant 0 : i32
    %c0_i32_0 = arith.constant 0 : i32
    %c0_i32_1 = arith.constant 0 : i32
    return %arg0, %c0_i32, %c0_i32_0 : i32, i32, i32
  }
  func.func @transform_5(%arg0: i32, %arg1: memref<2xi32, #tpu.memory_space<smem>>) -> (i32, i32, i32) {
    %c0_i32 = arith.constant 0 : i32
    %c0_i32_0 = arith.constant 0 : i32
    %c0_i32_1 = arith.constant 0 : i32
    return %arg0, %c0_i32, %c0_i32_0 : i32, i32, i32
  }
  func.func @transform_6(%arg0: i32, %arg1: memref<2xi32, #tpu.memory_space<smem>>) -> (i32, i32, i32) {
    %c0_i32 = arith.constant 0 : i32
    %c0_i32_0 = arith.constant 0 : i32
    %c0_i32_1 = arith.constant 0 : i32
    return %arg0, %c0_i32, %c0_i32_0 : i32, i32, i32
  }
  func.func @transform_7(%arg0: i32, %arg1: memref<2xi32, #tpu.memory_space<smem>>) -> (i32, i32, i32) {
    %c0_i32 = arith.constant 0 : i32
    %c0_i32_0 = arith.constant 0 : i32
    %c0_i32_1 = arith.constant 0 : i32
    return %arg0, %c0_i32, %c0_i32_0 : i32, i32, i32
  }
  func.func @transform_8(%arg0: i32, %arg1: memref<2xi32, #tpu.memory_space<smem>>) -> (i32, i32, i32) {
    %c0_i32 = arith.constant 0 : i32
    %c0_i32_0 = arith.constant 0 : i32
    %c0_i32_1 = arith.constant 0 : i32
    return %arg0, %c0_i32, %c0_i32_0 : i32, i32, i32
  }
  func.func @transform_9(%arg0: i32, %arg1: memref<2xi32, #tpu.memory_space<smem>>) -> (i32, i32, i32) {
    %c0_i32 = arith.constant 0 : i32
    %c0_i32_0 = arith.constant 0 : i32
    %c0_i32_1 = arith.constant 0 : i32
    return %arg0, %c0_i32, %c0_i32_0 : i32, i32, i32
  }
  func.func @transform_10(%arg0: i32, %arg1: memref<2xi32, #tpu.memory_space<smem>>) -> (i32, i32, i32) {
    %c0_i32 = arith.constant 0 : i32
    %c0_i32_0 = arith.constant 0 : i32
    %c0_i32_1 = arith.constant 0 : i32
    return %arg0, %c0_i32, %c0_i32_0 : i32, i32, i32
  }
  func.func @transform_11(%arg0: i32, %arg1: memref<2xi32, #tpu.memory_space<smem>>) -> (i32, i32, i32) {
    %c0_i32 = arith.constant 0 : i32
    %c0_i32_0 = arith.constant 0 : i32
    %c0_i32_1 = arith.constant 0 : i32
    return %arg0, %c0_i32, %c0_i32_0 : i32, i32, i32
  }
  func.func @transform_12(%arg0: i32, %arg1: memref<2xi32, #tpu.memory_space<smem>>) -> (i32, i32, i32) {
    %c0_i32 = arith.constant 0 : i32
    %c0_i32_0 = arith.constant 0 : i32
    %c0_i32_1 = arith.constant 0 : i32
    return %arg0, %c0_i32, %c0_i32_0 : i32, i32, i32
  }
  func.func @transform_13(%arg0: i32, %arg1: memref<2xi32, #tpu.memory_space<smem>>) -> (i32, i32) {
    %c0_i32 = arith.constant 0 : i32
    %c0_i32_0 = arith.constant 0 : i32
    %c0_i32_1 = arith.constant 0 : i32
    return %c0_i32, %c0_i32_0 : i32, i32
  }
  func.func @transform_14(%arg0: i32, %arg1: memref<2xi32, #tpu.memory_space<smem>>) -> (i32, i32) {
    %c0_i32 = arith.constant 0 : i32
    %c0_i32_0 = arith.constant 0 : i32
    %c0_i32_1 = arith.constant 0 : i32
    return %c0_i32, %c0_i32_0 : i32, i32
  }
  func.func @transform_15(%arg0: i32, %arg1: memref<2xi32, #tpu.memory_space<smem>>) -> (i32, i32) {
    %c0_i32 = arith.constant 0 : i32
    %c0_i32_0 = arith.constant 0 : i32
    %c0_i32_1 = arith.constant 0 : i32
    return %c0_i32, %c0_i32_0 : i32, i32
  }
  func.func @transform_16(%arg0: i32, %arg1: memref<2xi32, #tpu.memory_space<smem>>) -> (i32, i32) {
    %c0_i32 = arith.constant 0 : i32
    %c0_i32_0 = arith.constant 0 : i32
    %c0_i32_1 = arith.constant 0 : i32
    return %c0_i32, %c0_i32_0 : i32, i32
  }
}

</mosaic_0001>

<bundles_post_ra>
// kernel: text_encoder_forward.1
= control target key start
LH: loop header
LB: loop body
LE: loop exit
PB: predicated region body
PF: predicated region fallthrough
CT: control target
= control target key end

     0   :  { %s2451_s27 = smov [#allocation4]   ;;  %s3082_s0 = inlined_call_operand.vmem [shape: s32[2], index: 0, kind: input, shape index: {}]   ;;  %s3083_s1 = inlined_call_operand.vmem [shape: f32[32,32], index: 1, kind: input, shape index: {}]   ;;  %s3084_s2 = inlined_call_operand.vmem [shape: bf16[2,32,96], index: 2, kind: input, shape index: {}]   ;;  %s3085_s3 = inlined_call_operand.vmem [shape: f32[2,1,96], index: 3, kind: input, shape index: {}]   ;;  %s3086_s4 = inlined_call_operand.vmem [shape: bf16[2,32,32], index: 4, kind: input, shape index: {}]   ;;  %s3087_s5 = inlined_call_operand.vmem [shape: f32[2,1,32], index: 5, kind: input, shape index: {}]   ;;  %s3088_s6 = inlined_call_operand.vmem [shape: f32[2,1,32], index: 6, kind: input, shape index: {}]   ;;  %s3089_s7 = inlined_call_operand.vmem [shape: f32[2,1,32], index: 7, kind: input, shape index: {}]   ;;  %s3090_s8 = inlined_call_operand.vmem [shape: bf16[2,96,64], index: 8, kind: input, shape index: {}]   ;;  %s3091_s9 = inlined_call_operand.vmem [shape: f32[2,1,64], index: 9, kind: input, shape index: {}]   ;;  %s3092_s10 = inlined_call_operand.vmem [shape: bf16[2,192,32], index: 10, kind: input, shape index: {}]   ;;  %s3093_s11 = inlined_call_operand.vmem [shape: f32[2,1,32], index: 11, kind: input, shape index: {}]   ;;  %s3094_s12 = inlined_call_operand.vmem [shape: f32[2,1,32], index: 12, kind: input, shape index: {}]   ;;  %s3095_s13 = inlined_call_operand.vmem [shape: f32[2,1,32], index: 13, kind: input, shape index: {}]   ;;  %s3096_s14 = inlined_call_operand.vmem [shape: bf16[32,16], index: 14, kind: input, shape index: {}]   ;;  %s3097_s15 = inlined_call_operand.vmem [shape: f32[1,16], index: 15, kind: input, shape index: {}]   ;;  %s3098_s16 = inlined_call_operand.hbm [shape: f32[32,32], index: 16, kind: output, shape index: {0}]   ;;  %s3099_s17 = inlined_call_operand.vmem [shape: f32[32,16], index: 17, kind: output, shape index: {1}]  }
   0x1   :  { %3104 = sst [smem:[#allocation10_spill]] %s3082_s0 }
   0x2   :  { %3105 = sst [smem:[#allocation11_spill]] %s3083_s1 }
   0x3   :  { %3106 = sst [smem:[#allocation12_spill]] %s3084_s2 }
   0x4   :  { %3107 = sst [smem:[#allocation13_spill]] %s3086_s4 }
   0x5   :  { %3108 = sst [smem:[#allocation14_spill]] %s3092_s10 }
   0x6   :  { %3109 = sst [smem:[#allocation15_spill]] %s3096_s14 }
   0x7   :  { %3110 = sst [smem:[#allocation16_spill]] %s3097_s15 }
   0x8   :  { %3111 = sst [smem:[#allocation17_spill]] %s3098_s16 }
   0x9   :  { %3112 = sst [smem:[#allocation18_spill]] %s3099_s17 }
   0xa   :  { %s3113_s26 = sld [smem:[#allocation10_spill]] }
  0x10   :  { %s24_s10 = sshll.u32 %s3113_s26, 4  ;;  %s25_s10 = int_to_ptr.vmem [resolvable:$true] %s24_s10 }
  0x11   :  { %27 = dma.vmem_to_smem %s25_s10, 16, %s2451_s27, [#allocation3] }
  0x12   :  { %2441 = dma.done.wait [#allocation3], 16 }
  0x13   :  { %2442 = vsyncadd [#allocation3], 4294967280 }
  0x14   :  { %30 = sfence }
  0x15   :  { %31 = vsyncpa [#allocation6], 0  ;;  %s2556_s28 = smov 0  }
  0x16 LB: > { %3114 = sst [smem:[#allocation9_spill]] %s2449_s28  ;;  %s2562_s29 = sadd.s32 4294967295, %s2449_s28   ;;  %s2449_s28 = sphi %s2556_s28, %s37_s28  }
  0x17   : > { %p2127_p0 = scmp.ge.s32.totalorder %s2449_s28, 1  ;;  %p559_p1 = scmp.lt.s32.totalorder %s2449_s28, 3 }
  0x19   : > { %p560_p2 = pnand %p2127_p0, %p559_p1 }
  0x1a   : > { %p643_p3 = scmp.lt.s32.totalorder (!%p560_p2), %s2562_s29, 1  ;;  %s3115_s2 = sld [smem:[#allocation12_spill]] (!%p560_p2) }
  0x1b   : > { %563 = sbr.rel (%p560_p2) target bundleno = 2680 (0xa78), region = 80  ;;  %s3116_s4 = sld [smem:[#allocation13_spill]] (!%p560_p2) }
  0x1c   : > { %s3117_s27 = sld [smem:[#allocation14_spill]] (!%p560_p2)  ;;  %p2134_p4 = scmp.ne.s32.totalorder (!%p560_p2), %s2562_s29, 0 }
  0x20   : > { %s2568_s10 = scalar_select %p643_p3, %s2562_s29, 1 }
  0x21   : > { %s3118_s23 = sld [smem:[#allocation11_spill]] (!%p2134_p4) }
  0x22   : > { %s2262_s0 = sshll.u32 %s2568_s10, 4  ;;  %s2290_s19 = smul.u32 48, %s2568_s10 }
  0x23   : > { %s647_s21 = scalar_lea.vmem %s3115_s2, %s2262_s0  ;;  %s2581_s24 = scalar_lea.vmem %s3116_s4, %s2262_s0 }
  0x24   : > { %s2291_s22 = smul.u32 96, %s2568_s10  ;;  %s2604_s4 = scalar_lea.vmem %s3090_s8, %s2290_s19 }
  0x25   : > { %s680_s16 = scalar_lea.vmem %s3093_s11, %s2568_s10  ;;  %s683_s1 = scalar_lea.vmem %s3094_s12, %s2568_s10 }
  0x26   : > { %s2613_s15 = scalar_lea.vmem %s3117_s27, %s2291_s22  ;;  %s686_s14 = scalar_lea.vmem %s3095_s13, %s2568_s10 }
  0x27   : > { %691 = sbr.rel (%p2134_p4) target bundleno = 49 (0x31), region = 84 }
  0x2c   : > { %v692_v0 = vld [vmem:[%s3118_s23] sm:$0xff]  ;;  %vm696_vm0 = vcmask 261120   ;;  %v693_v1 = vld [vmem:[%s3118_s23 + $0x8] sm:$0xff]  ;;  %v694_v2 = vld [vmem:[%s3118_s23 + $0x10] sm:$0xff] }
  0x2d   : > { %697 = vst.msk [vmem:[#allocation2] sm:$0xff] %vm696_vm0, %v692_v0  ;;  %v695_v3 = vld [vmem:[%s3118_s23 + $0x18] sm:$0xff] }
  0x2e   : > { %698 = vst.msk [vmem:[#allocation2 + $0x8] sm:$0xff] %vm696_vm0, %v693_v1 }
  0x2f   : > { %699 = vst.msk [vmem:[#allocation2 + $0x10] sm:$0xff] %vm696_vm0, %v694_v2 }
  0x30   : > { %700 = vst.msk [vmem:[#allocation2 + $0x18] sm:$0xff] %vm696_vm0, %v695_v3 }
  0x31 PF: > { %v2265_v4 = vld [vmem:[%s647_s21 + $0x8] sm:$0xff]  ;;  %v701_v5 = vlaneseq  ;;  %s719_s26 = sld [smem:[#allocation4]]  ;;  %v2264_v6 = vld [vmem:[%s647_s21] sm:$0xff]  ;;  %v2452_v12 = vmov 0.0   ;;  %vm795_vm3 = vcmask 261120   ;;  %s3119_s19 = scalar_lea.vmem %s3085_s3, %s2568_s10  ;;  %vm840_vm8 = vcmask 130048  }
  0x32   : > { %808 = vmatpush.bf16.msra.mxu0 %v2265_v4  ;;  %s2669_s21 = sld [smem:[#allocation4 + $0x1]]  ;;  %v2338_v31 = vld [vmem:[%s3119_s19] ss:$0 sm:$0xff]  ;;  %s2453_s0 = smov 96   ;;  %v2455_v62 = vmov -10000.0  }
  0x33   : > { %v2637_v7 = vshrl.u32 %v701_v5, 7  ;;  %s2454_s25 = smov 112   ;;  %v2706_v53 = vand.u32 127, %v701_v5  ;;  %s2456_s17 = smov 64  }
  0x34   : > { %v765_v10 = vld [vmem:[#allocation2] sm:$0xff]  ;;  %s2457_s27 = smov 16   ;;  %s3120_s18 = scalar_lea.vmem %s3087_s5, %s2568_s10 }
  0x35   : > { %v2640_v8 = vadd.s32 8, %v2637_v7  ;;  %v766_v11 = vld [vmem:[#allocation2 + $0x8] sm:$0xff]  ;;  %v704_v18 = vadd.s32 16, %v2637_v7  ;;  %v2674_v19 = vadd.s32 24, %v2637_v7  ;;  %s3122_s20 = scalar_lea.vmem %s3089_s7, %s2568_s10  ;;  %s2459_s19 = smov 32  }
  0x36   : > { %809 = vmatpush.bf16.msra.mxu0 %v2264_v6  ;;  %v767_v21 = vld [vmem:[#allocation2 + $0x10] sm:$0xff]  ;;  %p2247_p5 = scmp.ne.s32.totalorder %s2562_s29, 1 }
  0x37   : > { %v2642_v9 = vstv %s719_s26  ;;  %v768_v22 = vld [vmem:[#allocation2 + $0x18] sm:$0xff] }
  0x38   : > { %vm725_vm1 = vcmp.lt.s32.totalorder %v2637_v7, %v2642_v9  ;;  %vm726_vm2 = vcmp.lt.s32.totalorder %v2640_v8, %v2642_v9  ;;  %s743_s28 = sadd.s32 16, %s2669_s21  ;;  %vm727_vm4 = vcmp.lt.s32.totalorder %v704_v18, %v2642_v9  ;;  %vm728_vm5 = vcmp.lt.s32.totalorder %v2674_v19, %v2642_v9 }
  0x39   : > { %v2652_v13 = vsel %vm725_vm1, 1.0, %v2452_v12  ;;  %v2658_v14 = vsel %vm726_vm2, 1.0, %v2452_v12  ;;  %v744_v20 = vstv %s743_s28  ;;  %v735_v23 = vsel %vm727_vm4, 1.0, %v2452_v12  ;;  %s3125_s28 = sld [smem:[#allocation16_spill]] (!%p2247_p5) }
  0x3a   : > { %v2661_v15 = vmul.f32 %v765_v10, %v2652_v13  ;;  %v2664_v16 = vmul.f32 %v766_v11, %v2658_v14  ;;  %vm747_vm6 = vcmp.lt.s32.totalorder %v704_v18, %v744_v20  ;;  %vm748_vm7 = vcmp.lt.s32.totalorder %v2674_v19, %v744_v20 }
  0x3b   : > { %v736_v24 = vsel %vm728_vm5, 1.0, %v2452_v12  ;;  %v2682_v25 = vsel %vm747_vm6, 1.0, %v735_v23  ;;  %vm737_vm9 = vcmp.lt.s32.totalorder %v2706_v53, %v2642_v9 }
  0x3c   : > { %v773_v17 = vpack.c.bf16 %v2664_v16, %v2661_v15  ;;  %v2684_v26 = vsel %vm748_vm7, 1.0, %v736_v24  ;;  %v2687_v27 = vmul.f32 %v767_v21, %v2682_v25  ;;  %vm738_vm10 = vmand %vm737_vm9, %vm725_vm1 }
  0x3d   : > { %v2690_v28 = vmul.f32 %v768_v22, %v2684_v26  ;;  %v2718_v63 = vsel %vm738_vm10, 0.0, %v2455_v62  ;;  %vm739_vm11 = vmand %vm737_vm9, %vm726_vm2  ;;  %vm1353_vm10 = vcmp.lt.s32.totalorder %v2637_v7, 1 }
  0x3e   : > { %2147 = vmatmul.msk.bf16.vlgmr.msra.gmra.mxu0 %vm795_vm3, %v773_v17  ;;  %v2726_v3 = vsel %vm739_vm11, 0.0, %v2455_v62 }
  0x3f   : > { %v774_v29 = vpack.c.bf16 %v2690_v28, %v2687_v27 }
  0x4e   : > { %2148 = vmatmul.msk.bf16.gmra.mxu0 %vm795_vm3, %v774_v29 }
  0xbb   : > { %v811_v30 = vpop.f32.mrf.mxu0 }
  0xbc   : > { %v812_v32 = vadd.f32 %v2338_v31, %v811_v30 }
  0xbe   : > { %v829_v34 = vpack.c.bf16 %v812_v32, %v812_v32 }
  0xc0   : > { %v835_v37 = vunpack.c.l.b16 %v829_v34 }
  0xc3   : > { %v813_v33 = vpop.f32.mrf.mxu0 }
  0xc4   : > { %v814_v35 = vadd.f32 %v2338_v31, %v813_v33 }
  0xc6   : > { %v830_v36 = vpack.c.bf16 %v814_v35, %v814_v35  ;;  %v2318_v40 = vpack.i.bf16 %v814_v35, %v812_v32 }
  0xc8   : > { %v836_v38 = vunpack.c.l.b16 %v830_v36 }
  0xca   : > { %v837_v39 = vpack.c.b16 %v836_v38, %v835_v37 }
  0xcb   : > { %v816_v41 = vpop.f32.mrf.mxu0 }
  0xcc   : > { %838 = vrot.lane.b32.xlu0 %v837_v39, %s2453_s0  ;;  %v817_v42 = vadd.f32 %v2338_v31, %v816_v41 }
  0xce   : > { %v1004_v45 = vpack.c.bf16 %v817_v42, %v817_v42 }
  0xd0   : > { %v1010_v48 = vunpack.c.l.b16 %v1004_v45 }
  0xd3   : > { %v818_v46 = vpop.f32.mrf.mxu0 }
  0xd4   : > { %2319 = vrot.lane.b32.xlu0 %v2318_v40, %s2454_s25  ;;  %v819_v47 = vadd.f32 %v2338_v31, %v818_v46 }
  0xd6   : > { %v1005_v49 = vpack.c.bf16 %v819_v47, %v819_v47  ;;  %v2323_v50 = vpack.i.bf16 %v819_v47, %v817_v42 }
  0xd8   : > { %v1011_v51 = vunpack.c.l.b16 %v1005_v49  ;;  %2324 = vrot.lane.b32.xlu1 %v2323_v50, %s2454_s25  ;;  %s3123_s25 = scalar_lea.vmem %s3091_s9, %s2568_s10 }
  0xda   : > { %v2703_v52 = vpack.c.b16 %v1011_v51, %v1010_v48 }
 0x13e   : > { %v839_v43 = vpop.permute.xlu0 %838 }
 0x13f   : > { %v845_v44 = vsel %vm840_vm8, %v839_v43, 0 }
 0x140   : > { %854 = vmatpush.bf16.xpose.msra.mxu1 %v845_v44 }
 0x146   : > { %v2320_v10 = vpop.permute.xlu0 %2319 }
 0x147   : > { %2149 = vmatmul.msk.bf16.vlgmr.msra.gmra.mxu1 %vm840_vm8, %v837_v39  ;;  %v2322_v11 = vunpack.i.h.bf16 %v2320_v10  ;;  %v2321_v17 = vunpack.i.l.bf16 %v2320_v10 }
 0x149   : > { %v832_v18 = vpack.c.bf16 %v2322_v11, %v2322_v11  ;;  %v831_v20 = vpack.c.bf16 %v2321_v17, %v2321_v17 }
 0x14a   : > { %v2325_v54 = vpop.permute.xlu1 %2324 }
 0x14b   : > { %v2327_v55 = vunpack.i.h.bf16 %v2325_v54  ;;  %v2326_v56 = vunpack.i.l.bf16 %v2325_v54  ;;  %v864_v9 = vunpack.c.l.b16 %v832_v18  ;;  %v863_v21 = vunpack.c.l.b16 %v831_v20 }
 0x14d   : > { %v1007_v57 = vpack.c.bf16 %v2327_v55, %v2327_v55  ;;  %v1006_v58 = vpack.c.bf16 %v2326_v56, %v2326_v56  ;;  %v2731_v22 = vpack.c.b16 %v864_v9, %v863_v21 }
 0x14f   : > { %v1038_v59 = vunpack.c.l.b16 %v1007_v57  ;;  %v1037_v60 = vunpack.c.l.b16 %v1006_v58 }
 0x151   : > { %v2713_v61 = vpack.c.b16 %v1038_v59, %v1037_v60  ;;  %v757_v60 = vstv %s2669_s21  ;;  %s3121_s21 = scalar_lea.vmem %s3088_s6, %s2568_s10 }
 0x152   : > { %vm758_vm12 = vcmp.lt.s32.totalorder %v2706_v53, %v757_v60  ;;  %vm759_vm13 = vcmp.lt.s32.totalorder %v2637_v7, %v757_v60  ;;  %vm760_vm15 = vcmp.lt.s32.totalorder %v2640_v8, %v757_v60 }
 0x153   : > { %1040 = vrot.lane.b32.xlu0 %v2713_v61, %s2453_s0  ;;  %vm761_vm14 = vmand %vm758_vm12, %vm759_vm13 }
 0x154   : > { %vm762_vm0 = vmand %vm758_vm12, %vm760_vm15  ;;  %vm1398_vm15 = vcmp.lt.s32.totalorder %v2637_v7, 7 }
 0x155   : > { %v764_v53 = vsel %vm762_vm0, 0.0, %v2455_v62 }
 0x1c4   : > { %v856_v0 = vpop.f32.mrf.mxu1 }
 0x1c5   : > { %v857_v1 = vadd.f32 %v856_v0, %v2718_v63  ;;  %v1041_v35 = vpop.permute.xlu0 %1040 }
 0x1c6   : > { %v1046_v37 = vsel %vm840_vm8, %v1041_v35, 0 }
 0x1c7   : > { %v888_v2 = vsel %vm840_vm8, %v857_v1, -inf }
 0x1c8   : > { %889 = vmax.xlane.f32.xlu1 %v888_v2 }
 0x1cc   : > { %v858_v4 = vpop.f32.mrf.mxu1 }
 0x1cd   : > { %v859_v5 = vadd.f32 %v858_v4, %v2726_v3 }
 0x1cf   : > { %v891_v6 = vsel %vm840_vm8, %v859_v5, -inf }
 0x1d0   : > { %892 = vmax.xlane.f32.xlu2 %v891_v6 }
 0x1e1   : > { %941 = vrot.lane.b32.xlu1 %v837_v39, %s2456_s17 }
 0x1e8   : > { %866 = vrot.lane.b32.xlu2 %v2731_v22, %s2453_s0 }
 0x23b   : > { %v890_v23 = vpop.xlane.xlu1 %889 }
 0x23c   : > { %v900_v24 = vsub.f32 %v857_v1, %v890_v23 }
 0x23e   : > { %v904_v29 = vmul.f32 1.442695, %v900_v24 }
 0x240   : > { %2346 = vpow2.f32 %v904_v29 }
 0x243   : > { %v893_v30 = vpop.xlane.xlu2 %892 }
 0x244   : > { %v901_v31 = vsub.f32 %v859_v5, %v893_v30 }
 0x246   : > { %v2347_v32 = vpop.eup %2346  ;;  %v906_v33 = vmul.f32 1.442695, %v901_v31 }
 0x247   : > { %v912_v34 = vsel %vm840_vm8, %v2347_v32, 0.0 }
 0x248   : > { %2348 = vpow2.f32 %v906_v33  ;;  %913 = vadd.xlane.f32.xlu0 %v912_v34 }
 0x24b   : > { %v867_v36 = vpop.permute.xlu2 %866 }
 0x24c   : > { %v872_v38 = vsel %vm840_vm8, %v867_v36, 0 }
 0x24d   : > { %881 = vmatpush.bf16.xpose.msra.mxu2 %v872_v38 }
 0x24e   : > { %v2349_v39 = vpop.eup %2348 }
 0x24f   : > { %v915_v40 = vsel %vm840_vm8, %v2349_v39, 0.0 }
 0x250   : > { %916 = vadd.xlane.f32.xlu2 %v915_v40 }
 0x253   : > { %v942_v41 = vpop.permute.xlu1 %941 }
 0x254   : > { %2150 = vmatmul.msk.bf16.vlgmr.msra.gmra.mxu2 %vm840_vm8, %v2731_v22  ;;  %954 = vmatpush.bf16.msrb.mxu1 %v942_v41 }
 0x255   : > { %1055 = vmatpush.bf16.xpose.msrb.mxu2 %v1046_v37 }
 0x25c   : > { %1013 = vrot.lane.b32.xlu0 %v2703_v52, %s2453_s0 }
 0x264   : > { %2154 = vmatmul.msk.bf16.vlgmr.msrb.gmra.mxu2 %vm840_vm8, %v2713_v61 }
 0x2bb   : > { %v914_v42 = vpop.xlane.xlu0 %913 }
 0x2bc   : > { %2350 = vrcp.f32 %v914_v42 }
 0x2c2   : > { %v2351_v44 = vpop.eup %2350 }
 0x2c3   : > { %v917_v43 = vpop.xlane.xlu2 %916  ;;  %v928_v45 = vmul.f32 %v2351_v44, %v2347_v32 }
 0x2c4   : > { %2352 = vrcp.f32 %v917_v43 }
 0x2c5   : > { %v932_v47 = vpack.c.bf16 %v928_v45, %v928_v45 }
 0x2c7   : > { %v938_v51 = vunpack.c.l.b16 %v932_v47 }
 0x2ca   : > { %v2353_v46 = vpop.eup %2352 }
 0x2cb   : > { %v929_v48 = vmul.f32 %v2353_v46, %v2349_v39 }
 0x2cd   : > { %v933_v49 = vpack.c.bf16 %v929_v48, %v929_v48 }
 0x2ce   : > { %v1014_v50 = vpop.permute.xlu0 %1013 }
 0x2cf   : > { %v939_v54 = vunpack.c.l.b16 %v933_v49  ;;  %v1019_v55 = vsel %vm840_vm8, %v1014_v50, 0 }
 0x2d0   : > { %1028 = vmatpush.bf16.xpose.msra.mxu1 %v1019_v55 }
 0x2d1   : > { %v940_v56 = vpack.c.b16 %v939_v54, %v938_v51 }
 0x2d3   : > { %2151 = vmatmul.msk.bf16.vlgmr.msrb.gmra.mxu1 %vm840_vm8, %v940_v56 }
 0x2d7   : > { %v883_v57 = vpop.f32.mrf.mxu2 }
 0x2d8   : > { %v884_v58 = vadd.f32 %v883_v57, %v2718_v63  ;;  %v763_v63 = vsel %vm761_vm14, 0.0, %v2455_v62 }
 0x2da   : > { %v894_v59 = vsel %vm840_vm8, %v884_v58, -inf }
 0x2db   : > { %895 = vmax.xlane.f32.xlu2 %v894_v59 }
 0x2df   : > { %v885_v0 = vpop.f32.mrf.mxu2 }
 0x2e0   : > { %v886_v1 = vadd.f32 %v885_v0, %v2726_v3 }
 0x2e2   : > { %v897_v2 = vsel %vm840_vm8, %v886_v1, -inf }
 0x2e3   : > { %898 = vmax.xlane.f32.xlu1 %v897_v2  ;;  %2153 = vmatmul.msk.bf16.vlgmr.msra.gmra.mxu1 %vm840_vm8, %v2703_v52 }
 0x2e7   : > { %v1057_v4 = vpop.f32.mrf.mxu2 }
 0x2e8   : > { %v1058_v5 = vadd.f32 %v1057_v4, %v763_v63 }
 0x2ea   : > { %v1068_v6 = vsel %vm840_vm8, %v1058_v5, -inf }
 0x2eb   : > { %1069 = vmax.xlane.f32.xlu2 %v1068_v6 }
 0x2ef   : > { %v1059_v3 = vpop.f32.mrf.mxu2 }
 0x2f0   : > { %v1060_v10 = vadd.f32 %v1059_v3, %v764_v53 }
 0x2f2   : > { %v1071_v11 = vsel %vm840_vm8, %v1060_v10, -inf }
 0x2f3   : > { %1072 = vmax.xlane.f32.xlu0 %v1071_v11 }
 0x2fc   : > { %966 = vrot.lane.b32.xlu1 %v2731_v22, %s2456_s17 }
 0x34e   : > { %v896_v17 = vpop.xlane.xlu2 %895 }
 0x34f   : > { %v902_v18 = vsub.f32 %v884_v58, %v896_v17 }
 0x350   : > { %v2763_v9 = vpop.f32.mrf.mxu1 }
 0x351   : > { %v908_v20 = vmul.f32 1.442695, %v902_v18 }
 0x353   : > { %2354 = vpow2.f32 %v908_v20 }
 0x356   : > { %v899_v21 = vpop.xlane.xlu1 %898 }
 0x357   : > { %v903_v23 = vsub.f32 %v886_v1, %v899_v21 }
 0x358   : > { %v2766_v31 = vpop.f32.mrf.mxu1 }
 0x359   : > { %v2355_v24 = vpop.eup %2354  ;;  %v910_v29 = vmul.f32 1.442695, %v903_v23 }
 0x35a   : > { %v918_v62 = vsel %vm840_vm8, %v2355_v24, 0.0 }
 0x35b   : > { %2356 = vpow2.f32 %v910_v29  ;;  %919 = vadd.xlane.f32.xlu2 %v918_v62 }
 0x35e   : > { %v1070_v30 = vpop.xlane.xlu2 %1069 }
 0x35f   : > { %v1076_v32 = vsub.f32 %v1058_v5, %v1070_v30 }
 0x360   : > { %v1030_v38 = vpop.f32.mrf.mxu1 }
 0x361   : > { %v2357_v33 = vpop.eup %2356  ;;  %v1082_v22 = vmul.f32 1.442695, %v1076_v32  ;;  %v1031_v41 = vadd.f32 %v1030_v38, %v763_v63 }
 0x362   : > { %v921_v34 = vsel %vm840_vm8, %v2357_v33, 0.0 }
 0x363   : > { %2358 = vpow2.f32 %v1082_v22  ;;  %922 = vadd.xlane.f32.xlu2 %v921_v34  ;;  %v1062_v45 = vsel %vm840_vm8, %v1031_v41, -inf  ;;  %v2267_v22 = vld [vmem:[%s2581_s24 + $0x8] sm:$0xff] }
 0x364   : > { %1204 = vmatpush.bf16.msrb.mxu1 %v2267_v22 }
 0x366   : > { %v1073_v35 = vpop.xlane.xlu0 %1072 }
 0x367   : > { %v1077_v36 = vsub.f32 %v1060_v10, %v1073_v35 }
 0x368   : > { %v1032_v46 = vpop.f32.mrf.mxu1 }
 0x369   : > { %v2359_v37 = vpop.eup %2358  ;;  %v1084_v39 = vmul.f32 1.442695, %v1077_v36  ;;  %v1033_v47 = vadd.f32 %v1032_v46, %v764_v53 }
 0x36a   : > { %v1092_v40 = vsel %vm840_vm8, %v2359_v37, 0.0 }
 0x36b   : > { %2360 = vpow2.f32 %v1084_v39  ;;  %1093 = vadd.xlane.f32.xlu2 %v1092_v40  ;;  %v1065_v48 = vsel %vm840_vm8, %v1033_v47, -inf }
 0x36e   : > { %v967_v42 = vpop.permute.xlu1 %966 }
 0x36f   : > { %979 = vmatpush.bf16.msra.mxu3 %v967_v42 }
 0x371   : > { %v2361_v43 = vpop.eup %2360 }
 0x372   : > { %v1095_v44 = vsel %vm840_vm8, %v2361_v43, 0.0 }
 0x373   : > { %1096 = vadd.xlane.f32.xlu0 %v1095_v44  ;;  %1063 = vmax.xlane.f32.xlu2 %v1062_v45 }
 0x37b   : > { %1066 = vmax.xlane.f32.xlu2 %v1065_v48 }
 0x393   : > { %1140 = vrot.lane.b32.xlu2 %v2713_v61, %s2456_s17 }
 0x3ce   : > { %v920_v49 = vpop.xlane.xlu2 %919 }
 0x3cf   : > { %2362 = vrcp.f32 %v920_v49 }
 0x3d5   : > { %v2363_v51 = vpop.eup %2362 }
 0x3d6   : > { %v923_v50 = vpop.xlane.xlu2 %922  ;;  %v930_v54 = vmul.f32 %v2363_v51, %v2355_v24  ;;  %v2266_v51 = vld [vmem:[%s2581_s24] sm:$0xff] }
 0x3d7   : > { %2364 = vrcp.f32 %v923_v50  ;;  %1205 = vmatpush.bf16.msrb.mxu1 %v2266_v51 }
 0x3d8   : > { %v934_v58 = vpack.c.bf16 %v930_v54, %v930_v54 }
 0x3da   : > { %v963_v60 = vunpack.c.l.b16 %v934_v58 }
 0x3dd   : > { %v2365_v55 = vpop.eup %2364 }
 0x3de   : > { %v1094_v56 = vpop.xlane.xlu2 %1093  ;;  %v931_v57 = vmul.f32 %v2365_v55, %v2357_v33 }
 0x3df   : > { %2366 = vrcp.f32 %v1094_v56 }
 0x3e0   : > { %v935_v59 = vpack.c.bf16 %v931_v57, %v931_v57 }
 0x3e2   : > { %v964_v0 = vunpack.c.l.b16 %v935_v59 }
 0x3e4   : > { %v965_v1 = vpack.c.b16 %v964_v0, %v963_v60 }
 0x3e5   : > { %v2367_v5 = vpop.eup %2366 }
 0x3e6   : > { %v1097_v2 = vpop.xlane.xlu0 %1096  ;;  %2152 = vmatmul.msk.bf16.vlgmr.msra.gmra.mxu3 %vm840_vm8, %v965_v1  ;;  %v1064_v63 = vpop.xlane.xlu2 %1063  ;;  %v1104_v53 = vmul.f32 %v2367_v5, %v2359_v37 }
 0x3e7   : > { %2368 = vrcp.f32 %v1097_v2  ;;  %v1074_v61 = vsub.f32 %v1031_v41, %v1064_v63 }
 0x3e8   : > { %v1108_v21 = vpack.c.bf16 %v1104_v53, %v1104_v53 }
 0x3e9   : > { %v1078_v4 = vmul.f32 1.442695, %v1074_v61 }
 0x3ea   : > { %v1137_v29 = vunpack.c.l.b16 %v1108_v21 }
 0x3eb   : > { %2370 = vpow2.f32 %v1078_v4 }
 0x3ed   : > { %v2369_v6 = vpop.eup %2368 }
 0x3ee   : > { %v1105_v3 = vmul.f32 %v2369_v6, %v2361_v43  ;;  %v1067_v10 = vpop.xlane.xlu2 %1066 }
 0x3ef   : > { %v1075_v11 = vsub.f32 %v1033_v47, %v1067_v10 }
 0x3f0   : > { %v1109_v17 = vpack.c.bf16 %v1105_v3, %v1105_v3 }
 0x3f1   : > { %v2371_v18 = vpop.eup %2370  ;;  %v1080_v20 = vmul.f32 1.442695, %v1075_v11 }
 0x3f2   : > { %v1086_v23 = vsel %vm840_vm8, %v2371_v18, 0.0  ;;  %v1138_v24 = vunpack.c.l.b16 %v1109_v17 }
 0x3f3   : > { %2372 = vpow2.f32 %v1080_v20  ;;  %1087 = vadd.xlane.f32.xlu0 %v1086_v23 }
 0x3f4   : > { %v1139_v30 = vpack.c.b16 %v1138_v24, %v1137_v29 }
 0x3f6   : > { %v1141_v62 = vpop.permute.xlu2 %1140 }
 0x3f7   : > { %1153 = vmatpush.bf16.msrb.mxu0 %v1141_v62 }
 0x3f9   : > { %v2373_v32 = vpop.eup %2372 }
 0x3fa   : > { %2156 = vmatmul.msk.bf16.vlgmr.msrb.gmra.mxu0 %vm840_vm8, %v1139_v30  ;;  %v1089_v33 = vsel %vm840_vm8, %v2373_v32, 0.0 }
 0x3fb   : > { %1090 = vadd.xlane.f32.xlu1 %v1089_v33 }
 0x407   : > { %1115 = vrot.lane.b32.xlu0 %v2703_v52, %s2456_s17 }
 0x466   : > { %v1088_v34 = vpop.xlane.xlu0 %1087 }
 0x467   : > { %2374 = vrcp.f32 %v1088_v34 }
 0x469   : > { %v981_v35 = vpop.f32.mrf.mxu3 }
 0x46d   : > { %v2375_v37 = vpop.eup %2374 }
 0x46e   : > { %v1091_v36 = vpop.xlane.xlu1 %1090  ;;  %v1102_v39 = vmul.f32 %v2375_v37, %v2371_v18 }
 0x46f   : > { %2376 = vrcp.f32 %v1091_v36 }
 0x470   : > { %v1106_v42 = vpack.c.bf16 %v1102_v39, %v1102_v39 }
 0x471   : > { %v983_v38 = vpop.f32.mrf.mxu3 }
 0x472   : > { %v2328_v40 = vpack.i.bf16 %v983_v38, %v981_v35  ;;  %v1112_v46 = vunpack.c.l.b16 %v1106_v42 }
 0x474   : > { %2329 = vrot.lane.b32.xlu2 %v2328_v40, %s2457_s27 }
 0x475   : > { %v2377_v41 = vpop.eup %2376 }
 0x476   : > { %v1103_v43 = vmul.f32 %v2377_v41, %v2373_v32  ;;  %v2458_v32 = vmov 32.0  }
 0x477   : > { %v1155_v44 = vpop.f32.mrf.mxu0  ;;  %2378 = vrcp.f32 %v2458_v32 }
 0x478   : > { %v1107_v45 = vpack.c.bf16 %v1103_v43, %v1103_v43 }
 0x479   : > { %v1116_v52 = vpop.permute.xlu0 %1115 }
 0x47a   : > { %v1113_v47 = vunpack.c.l.b16 %v1107_v45  ;;  %1128 = vmatpush.bf16.msrb.mxu3 %v1116_v52 }
 0x47c   : > { %v1114_v48 = vpack.c.b16 %v1113_v47, %v1112_v46 }
 0x47e   : > { %2155 = vmatmul.msk.bf16.vlgmr.msrb.gmra.mxu3 %vm840_vm8, %v1114_v48 }
 0x47f   : > { %v1157_v49 = vpop.f32.mrf.mxu0 }
 0x480   : > { %v2333_v50 = vpack.i.bf16 %v1157_v49, %v1155_v44 }
 0x482   : > { %2334 = vrot.lane.b32.xlu2 %v2333_v50, %s2457_s27 }
 0x4ce   : > { %v2330_v54 = vpop.permute.xlu2 %2329 }
 0x4cf   : > { %v2332_v55 = vunpack.i.h.bf16 %v2330_v54  ;;  %v2331_v56 = vunpack.i.l.bf16 %v2330_v54 }
 0x4d1   : > { %v995_v57 = vsel %vm840_vm8, %v2766_v31, %v2332_v55  ;;  %v994_v58 = vsel %vm840_vm8, %v2763_v9, %v2331_v56  ;;  %v2339_v9 = vld [vmem:[%s3120_s18] ss:$0 sm:$0xff] }
 0x4d2   : > { %v1170_v59 = vpack.c.bf16 %v995_v57, %v994_v58 }
 0x4d4   : > { %2165 = vmatmul.msk.bf16.vlgmr.msrb.gmra.mxu1 %vm795_vm3, %v1170_v59 }
 0x4dc   : > { %v2335_v0 = vpop.permute.xlu2 %2334 }
 0x4dd   : > { %v2337_v1 = vunpack.i.h.bf16 %v2335_v0  ;;  %v2336_v2 = vunpack.i.l.bf16 %v2335_v0 }
 0x501   : > { %v1130_v60 = vpop.f32.mrf.mxu3 }
 0x502   : > { %v1168_v61 = vsel %vm840_vm8, %v1130_v60, %v2336_v2 }
 0x509   : > { %v1132_v63 = vpop.f32.mrf.mxu3 }
 0x50a   : > { %v1169_v4 = vsel %vm840_vm8, %v1132_v63, %v2337_v1 }
 0x50b   : > { %v1171_v5 = vpack.c.bf16 %v1169_v4, %v1168_v61 }
 0x50d   : > { %2166 = vmatmul.msk.bf16.gmra.mxu1 %vm795_vm3, %v1171_v5 }
 0x551   : > { %v1207_v31 = vpop.f32.mrf.mxu1 }
 0x552   : > { %v1208_v6 = vadd.f32 %v2339_v9, %v1207_v31 }
 0x554   : > { %v1217_v53 = vadd.f32 %v1208_v6, %v2661_v15  ;;  %v2830_v6 = vld [vmem:[%s3121_s21] ss:$0 sm:$0xff] }
 0x556   : > { %v1223_v3 = vsel %vm795_vm3, %v1217_v53, 0.0 }
 0x557   : > { %1224 = vadd.xlane.f32.xlu1 %v1223_v3 }
 0x559   : > { %v1209_v10 = vpop.f32.mrf.mxu1 }
 0x55a   : > { %v1210_v11 = vadd.f32 %v2339_v9, %v1209_v10 }
 0x55c   : > { %v1218_v17 = vadd.f32 %v1210_v11, %v2664_v16  ;;  %v2379_v16 = vpop.eup %2378 }
 0x55d   : > { %v1236_v33 = vmul.f32 32.0, %v2379_v16  ;;  %vm1240_vm1 = vweird.f32 %v2379_v16 }
 0x55e   : > { %v1226_v18 = vsel %vm795_vm3, %v1218_v17, 0.0 }
 0x55f   : > { %1227 = vadd.xlane.f32.xlu0 %v1226_v18  ;;  %v1237_v22 = vsub.f32 1.0, %v1236_v33  ;;  %v2838_v18 = vld [vmem:[%s3122_s20] ss:$0 sm:$0xff] }
 0x561   : > { %v1238_v34 = vmul.f32 %v2379_v16, %v1237_v22 }
 0x563   : > { %v1239_v35 = vadd.f32 %v2379_v16, %v1238_v34 }
 0x565   : > { %v2805_v36 = vsel %vm1240_vm1, %v2379_v16, %v1239_v35 }
 0x58a   : > { %v1212_v20 = vpop.f32.mrf.mxu1 }
 0x58b   : > { %v1213_v21 = vadd.f32 %v2339_v9, %v1212_v20 }
 0x58d   : > { %v1219_v23 = vadd.f32 %v1213_v21, %v2687_v27 }
 0x58f   : > { %v1229_v24 = vsel %vm795_vm3, %v1219_v23, 0.0 }
 0x590   : > { %1230 = vadd.xlane.f32.xlu2 %v1229_v24 }
 0x592   : > { %v1214_v29 = vpop.f32.mrf.mxu1 }
 0x593   : > { %v1215_v62 = vadd.f32 %v2339_v9, %v1214_v29 }
 0x595   : > { %v1220_v15 = vadd.f32 %v1215_v62, %v2690_v28 }
 0x597   : > { %v1232_v30 = vsel %vm795_vm3, %v1220_v15, 0.0 }
 0x598   : > { %1233 = vadd.xlane.f32.xlu1 %v1232_v30 }
 0x5ca   : > { %v1225_v27 = vpop.xlane.xlu1 %1224 }
 0x5cb   : > { %v1242_v39 = vmul.f32 %v2805_v36, %v1225_v27 }
 0x5cd   : > { %v1246_v41 = vsub.f32 %v1217_v53, %v1242_v39 }
 0x5cf   : > { %v1250_v43 = vmul.f32 %v1246_v41, %v1246_v41 }
 0x5d1   : > { %v1254_v44 = vsel %vm795_vm3, %v1250_v43, 0.0 }
 0x5d2   : > { %v1228_v37 = vpop.xlane.xlu0 %1227 }
 0x5d3   : > { %v1243_v38 = vmul.f32 %v2805_v36, %v1228_v37 }
 0x5d5   : > { %v1247_v28 = vsub.f32 %v1218_v17, %v1243_v38 }
 0x5d7   : > { %v1251_v40 = vmul.f32 %v1247_v28, %v1247_v28 }
 0x5d9   : > { %v1257_v42 = vsel %vm795_vm3, %v1251_v40, 0.0 }
 0x5da   : > { %1258 = vadd.xlane.f32.xlu1 %v1257_v42 }
 0x5e2   : > { %1255 = vadd.xlane.f32.xlu1 %v1254_v44 }
 0x603   : > { %v1231_v45 = vpop.xlane.xlu2 %1230 }
 0x604   : > { %v1244_v52 = vmul.f32 %v2805_v36, %v1231_v45 }
 0x606   : > { %v2812_v46 = vsub.f32 %v1219_v23, %v1244_v52 }
 0x608   : > { %v1252_v47 = vmul.f32 %v2812_v46, %v2812_v46 }
 0x60a   : > { %v1260_v48 = vsel %vm795_vm3, %v1252_v47, 0.0 }
 0x60b   : > { %1261 = vadd.xlane.f32.xlu0 %v1260_v48  ;;  %v1234_v49 = vpop.xlane.xlu1 %1233 }
 0x60c   : > { %v1245_v50 = vmul.f32 %v2805_v36, %v1234_v49 }
 0x60e   : > { %v2818_v51 = vsub.f32 %v1220_v15, %v1245_v50 }
 0x610   : > { %v1253_v54 = vmul.f32 %v2818_v51, %v2818_v51 }
 0x612   : > { %v1263_v55 = vsel %vm795_vm3, %v1253_v54, 0.0 }
 0x613   : > { %1264 = vadd.xlane.f32.xlu2 %v1263_v55 }
 0x64d   : > { %v1259_v56 = vpop.xlane.xlu1 %1258 }
 0x64e   : > { %v1267_v57 = vmul.f32 %v1259_v56, %v2805_v36 }
 0x650   : > { %v1271_v58 = vadd.f32 0.0001, %v1267_v57 }
 0x652   : > { %2380 = vrsqrt.f32 %v1271_v58  ;;  %vm1290_vm4 = vweird.f32 %v1271_v58 }
 0x655   : > { %v1256_v59 = vpop.xlane.xlu1 %1255 }
 0x656   : > { %v1266_v60 = vmul.f32 %v1256_v59, %v2805_v36  ;;  %v1404_v59 = vadd.s32 1, %v2640_v8  ;;  %v2137_v8 = vadd.s32 4294967280, %v2674_v19 }
 0x658   : > { %v2381_v0 = vpop.eup %2380  ;;  %v1270_v1 = vadd.f32 0.0001, %v1266_v60  ;;  %vm1412_vm1 = vcmp.lt.s32.totalorder %v1404_v59, 16 }
 0x659   : > { %v1285_v2 = vmul.f32 %v2381_v0, %v1271_v58  ;;  %vm1291_vm2 = vweird.f32 %v2381_v0 }
 0x65a   : > { %2382 = vrsqrt.f32 %v1270_v1  ;;  %vm1292_vm5 = vmor %vm1290_vm4, %vm1291_vm2  ;;  %vm1280_vm7 = vweird.f32 %v1270_v1 }
 0x65b   : > { %v1286_v63 = vmul.f32 %v2381_v0, %v1285_v2  ;;  %v1358_v2 = vadd.s32 4294967295, %v2637_v7 }
 0x65d   : > { %v1287_v61 = vmul.f32 0.5, %v1286_v63  ;;  %vm1362_vm4 = vcmp.ge.s32.totalorder %v1358_v2, 0  ;;  %v2272_v2 = vld [vmem:[%s2604_s4 + $0x20] sm:$0xff] }
 0x65f   : > { %v1288_v4 = vsub.f32 1.5, %v1287_v61 }
 0x660   : > { %v2383_v5 = vpop.eup %2382 }
 0x661   : > { %v1289_v9 = vmul.f32 %v2381_v0, %v1288_v4  ;;  %v1275_v31 = vmul.f32 %v2383_v5, %v1270_v1  ;;  %vm1281_vm6 = vweird.f32 %v2383_v5 }
 0x662   : > { %vm1282_vm9 = vmor %vm1280_vm7, %vm1281_vm6  ;;  %vm1479_vm6 = vcmask 523264   ;;  %vm1523_vm7 = vcmask 785408  }
 0x663   : > { %v1293_v53 = vsel %vm1292_vm5, %v2381_v0, %v1289_v9  ;;  %v1276_v3 = vmul.f32 %v2383_v5, %v1275_v31 }
 0x664   : > { %v1315_v10 = vmul.f32 %v1293_v53, %v1247_v28 }
 0x665   : > { %v1277_v11 = vmul.f32 0.5, %v1276_v3  ;;  %v2888_v3 = vsel %vm1412_vm1, 1.0, %v2452_v12 }
 0x666   : > { %v1322_v17 = vmul.f32 %v2830_v6, %v1315_v10 }
 0x667   : > { %v1278_v20 = vsub.f32 1.5, %v1277_v11  ;;  %v1406_v11 = vadd.s32 1, %v2137_v8  ;;  %v2269_v8 = vld [vmem:[%s2604_s4 + $0x8] sm:$0xff] }
 0x668   : > { %v2841_v23 = vadd.f32 %v2838_v18, %v1322_v17 }
 0x669   : > { %v1279_v21 = vmul.f32 %v2383_v5, %v1278_v20  ;;  %v2894_v20 = vsel %vm1362_vm4, 1.0, %v2452_v12  ;;  %vm1414_vm5 = vcmp.lt.s32.totalorder %v1406_v11, 16 }
 0x66a   : > { %v2846_v15 = vmul.f32 %v2841_v23, %v2658_v14 }
 0x66b   : > { %v1283_v24 = vsel %vm1282_vm9, %v2383_v5, %v1279_v21 }
 0x66c   : > { %v1314_v29 = vmul.f32 %v1283_v24, %v1246_v41  ;;  %v1391_v16 = vpack.c.bf16 %v2846_v15, %v2846_v15  ;;  %v1350_v22 = vrot.slane %v2846_v15, 7  ;;  %v1395_v61 = vrot.slane %v2846_v15, 1 }
 0x66e   : > { %v1321_v62 = vmul.f32 %v2830_v6, %v1314_v29  ;;  %v1450_v27 = vunpack.c.l.b16 %v1391_v16 }
 0x670   : > { %v2849_v30 = vadd.f32 %v2838_v18, %v1321_v62 }
 0x672   : > { %v2853_v32 = vmul.f32 %v2849_v30, %v2652_v13 }
 0x674   : > { %v1390_v33 = vpack.c.bf16 %v2853_v32, %v2853_v32  ;;  %v1349_v34 = vrot.slane %v2853_v32, 7  ;;  %v1394_v1 = vrot.slane %v2853_v32, 1 }
 0x676   : > { %v1449_v35 = vunpack.c.l.b16 %v1390_v33  ;;  %v2866_v37 = vsel %vm1353_vm10, %v1349_v34, %v1350_v22  ;;  %v1401_v9 = vsel %vm1398_vm15, %v1394_v1, %v1395_v61 }
 0x678   : > { %v1453_v38 = vpack.c.b16 %v1450_v27, %v1449_v35 }
 0x67a   : > { %1455 = vrot.lane.b32.xlu0 %v1453_v38, %s2459_s19 }
 0x67e   : > { %v1262_v39 = vpop.xlane.xlu0 %1261 }
 0x67f   : > { %v1268_v28 = vmul.f32 %v1262_v39, %v2805_v36 }
 0x681   : > { %v1272_v40 = vadd.f32 0.0001, %v1268_v28 }
 0x683   : > { %2384 = vrsqrt.f32 %v1272_v40  ;;  %vm1300_vm12 = vweird.f32 %v1272_v40 }
 0x686   : > { %v1265_v41 = vpop.xlane.xlu2 %1264 }
 0x687   : > { %v1269_v42 = vmul.f32 %v1265_v41, %v2805_v36 }
 0x689   : > { %v2385_v43 = vpop.eup %2384  ;;  %v1273_v44 = vadd.f32 0.0001, %v1269_v42 }
 0x68a   : > { %v1295_v45 = vmul.f32 %v2385_v43, %v1272_v40  ;;  %vm1301_vm11 = vweird.f32 %v2385_v43 }
 0x68b   : > { %2386 = vrsqrt.f32 %v1273_v44  ;;  %vm1302_vm13 = vmor %vm1300_vm12, %vm1301_vm11  ;;  %vm1310_vm0 = vweird.f32 %v1273_v44 }
 0x68c   : > { %v1296_v52 = vmul.f32 %v2385_v43, %v1295_v45 }
 0x68e   : > { %v1297_v47 = vmul.f32 0.5, %v1296_v52 }
 0x690   : > { %v1298_v48 = vsub.f32 1.5, %v1297_v47 }
 0x691   : > { %v2387_v49 = vpop.eup %2386 }
 0x692   : > { %v1299_v50 = vmul.f32 %v2385_v43, %v1298_v48  ;;  %v1305_v54 = vmul.f32 %v2387_v49, %v1273_v44  ;;  %vm1311_vm14 = vweird.f32 %v2387_v49 }
 0x693   : > { %vm1312_vm2 = vmor %vm1310_vm0, %vm1311_vm14 }
 0x694   : > { %v1303_v55 = vsel %vm1302_vm13, %v2385_v43, %v1299_v50  ;;  %v1306_v56 = vmul.f32 %v2387_v49, %v1305_v54 }
 0x695   : > { %v1316_v57 = vmul.f32 %v1303_v55, %v2812_v46 }
 0x696   : > { %v1307_v58 = vmul.f32 0.5, %v1306_v56 }
 0x697   : > { %v1323_v60 = vmul.f32 %v2830_v6, %v1316_v57 }
 0x698   : > { %v1308_v0 = vsub.f32 1.5, %v1307_v58 }
 0x699   : > { %v2877_v63 = vadd.f32 %v2838_v18, %v1323_v60 }
 0x69a   : > { %v1309_v4 = vmul.f32 %v2387_v49, %v1308_v0 }
 0x69b   : > { %v1334_v46 = vmul.f32 %v2877_v63, %v2682_v25 }
 0x69c   : > { %v1313_v5 = vsel %vm1312_vm2, %v2387_v49, %v1309_v4  ;;  %v2270_v4 = vld [vmem:[%s2604_s4 + $0x10] sm:$0xff] }
 0x69d   : > { %v1317_v31 = vmul.f32 %v1313_v5, %v2818_v51  ;;  %v1396_v53 = vrot.slane %v1334_v46, 1  ;;  %v1351_v10 = vrot.slane %v1334_v46, 7  ;;  %v1431_v51 = vpack.c.bf16 %v1401_v9, %v1401_v9 }
 0x69e   : > { %v1392_v15 = vpack.c.bf16 %v1334_v46, %v1334_v46  ;;  %v2268_v46 = vld [vmem:[%s2604_s4] sm:$0xff] }
 0x69f   : > { %v1324_v17 = vmul.f32 %v2830_v6, %v1317_v31  ;;  %v1400_v19 = vsel %vm1398_vm15, %v1395_v61, %v1396_v53  ;;  %v1355_v21 = vsel %vm1353_vm10, %v1350_v22, %v1351_v10  ;;  %v1463_v33 = vunpack.c.l.b16 %v1431_v51  ;;  %v2271_v61 = vld [vmem:[%s2604_s4 + $0x18] sm:$0xff]  ;;  %v2283_v51 = vld [vmem:[%s2613_s15 + $0x48] sm:$0xff] }
 0x6a0   : > { %v1428_v24 = vmul.f32 %v2888_v3, %v1400_v19  ;;  %v1384_v6 = vmul.f32 %v2894_v20, %v1355_v21  ;;  %v2906_v22 = vsel %vm1414_vm5, 1.0, %v2452_v12  ;;  %v1451_v40 = vunpack.c.l.b16 %v1392_v15  ;;  %v2285_v21 = vld [vmem:[%s2613_s15 + $0x58] sm:$0xff]  ;;  %v2282_v15 = vld [vmem:[%s2613_s15 + $0x40] sm:$0xff] }
 0x6a1   : > { %v2900_v29 = vadd.f32 %v2838_v18, %v1324_v17  ;;  %v1387_v18 = vpack.c.bf16 %v2866_v37, %v2866_v37  ;;  %1762 = vmatpush.bf16.msra.mxu0 %v2285_v21 }
 0x6a2   : > { %v1432_v62 = vpack.c.bf16 %v1428_v24, %v1428_v24  ;;  %v1388_v41 = vpack.c.bf16 %v1384_v6, %v1384_v6  ;;  %v2284_v24 = vld [vmem:[%s2613_s15 + $0x50] sm:$0xff] }
 0x6a3   : > { %v1335_v16 = vmul.f32 %v2900_v29, %v2684_v26  ;;  %v1440_v58 = vunpack.c.l.b16 %v1387_v18 }
 0x6a4   : > { %v1464_v35 = vunpack.c.l.b16 %v1432_v62  ;;  %v1441_v32 = vunpack.c.l.b16 %v1388_v41  ;;  %v2342_v62 = vld [vmem:[%s3123_s25] ss:$0 sm:$0xff] }
 0x6a5   : > { %v1393_v27 = vpack.c.bf16 %v1335_v16, %v1335_v16  ;;  %v1397_v38 = vrot.slane %v1335_v16, 1  ;;  %v1352_v39 = vrot.slane %v1335_v16, 7  ;;  %1763 = vmatpush.bf16.msra.mxu0 %v2284_v24 }
 0x6a6   : > { %v1467_v28 = vpack.c.b16 %v1464_v35, %v1463_v33 }
 0x6a7   : > { %v1452_v42 = vunpack.c.l.b16 %v1393_v27  ;;  %v1399_v43 = vsel %vm1398_vm15, %v1396_v53, %v1397_v38  ;;  %v1402_v44 = vsel %vm1398_vm15, %v1397_v38, %v1394_v1  ;;  %v1357_v12 = vsel %vm1353_vm10, %v1352_v39, %v1349_v34  ;;  %v2273_v1 = vld [vmem:[%s2604_s4 + $0x28] sm:$0xff] }
 0x6a8   : > { %1469 = vrot.lane.b32.xlu1 %v1467_v28, %s2456_s17  ;;  %v1430_v45 = vmul.f32 %v2906_v22, %v1402_v44  ;;  %v1433_v52 = vpack.c.bf16 %v1399_v43, %v1399_v43  ;;  %v1382_v37 = vmul.f32 %v2894_v20, %v1357_v12  ;;  %v1354_v47 = vsel %vm1353_vm10, %v1351_v10, %v1352_v39 }
 0x6a9   : > { %v1454_v48 = vpack.c.b16 %v1452_v42, %v1451_v40  ;;  %v1389_v49 = vpack.c.bf16 %v1354_v47, %v1354_v47  ;;  %1530 = vmatpush.bf16.msra.mxu2 %v2273_v1  ;;  %1764 = vmatpush.bf16.msra.mxu0 %v2283_v51 }
 0x6aa   : > { %v1434_v50 = vpack.c.bf16 %v1430_v45, %v1430_v45  ;;  %v1386_v54 = vpack.c.bf16 %v1382_v37, %v1382_v37  ;;  %v1465_v55 = vunpack.c.l.b16 %v1433_v52  ;;  %v2281_v37 = vld [vmem:[%s2613_s15 + $0x38] sm:$0xff] }
 0x6ab   : > { %1457 = vrot.lane.b32.xlu2 %v1454_v48, %s2459_s19  ;;  %v1442_v34 = vunpack.c.l.b16 %v1389_v49  ;;  %1739 = vmatpush.bf16.msra.mxu3 %v2281_v37  ;;  %v2274_v37 = vld [vmem:[%s2613_s15] sm:$0xff]  ;;  %s3126_s19 = sld [smem:[#allocation18_spill]] (!%p2247_p5) }
 0x6ac   : > { %v1466_v56 = vunpack.c.l.b16 %v1434_v50  ;;  %v1439_v57 = vunpack.c.l.b16 %v1386_v54  ;;  %v2280_v50 = vld [vmem:[%s2613_s15 + $0x30] sm:$0xff] }
 0x6ad   : > { %v1444_v59 = vpack.c.b16 %v1442_v34, %v1441_v32  ;;  %1531 = vmatpush.bf16.msra.mxu2 %v2272_v2  ;;  %1765 = vmatpush.bf16.msra.mxu0 %v2282_v15 }
 0x6ae   : > { %v1468_v60 = vpack.c.b16 %v1466_v56, %v1465_v55  ;;  %v1443_v0 = vpack.c.b16 %v1440_v58, %v1439_v57  ;;  %v2279_v58 = vld [vmem:[%s2613_s15 + $0x28] sm:$0xff] }
 0x6af   : > { %1740 = vmatpush.bf16.msra.mxu3 %v2280_v50 }
 0x6b0   : > { %1471 = vrot.lane.b32.xlu0 %v1468_v60, %s2456_s17 }
 0x6b1   : > { %1532 = vmatpush.bf16.msra.mxu2 %v2271_v61 }
 0x6b3   : > { %1741 = vmatpush.bf16.msra.mxu3 %v2279_v58 }
 0x6b5   : > { %1533 = vmatpush.bf16.msra.mxu2 %v2270_v4 }
 0x6b9   : > { %1534 = vmatpush.bf16.msra.mxu2 %v2269_v8 }
 0x6bd   : > { %1535 = vmatpush.bf16.msra.mxu2 %v2268_v46  ;;  %v2278_v46 = vld [vmem:[%s2613_s15 + $0x20] sm:$0xff] }
 0x6be   : > { %1742 = vmatpush.bf16.msra.mxu3 %v2278_v46 }
 0x6ec   : > { %v1456_v5 = vpop.permute.xlu0 %1455 }
 0x6ed   : > { %v1475_v9 = vsel %vm795_vm3, %v1443_v0, %v1456_v5 }
 0x705   : > { %v1458_v10 = vpop.permute.xlu2 %1457 }
 0x706   : > { %v1478_v17 = vsel %vm795_vm3, %v1444_v59, %v1458_v10 }
 0x71a   : > { %v1470_v31 = vpop.permute.xlu1 %1469 }
 0x71b   : > { %v1481_v53 = vsel %vm1479_vm6, %v1475_v9, %v1470_v31 }
 0x71c   : > { %2195 = vmatmul.msk.bf16.vlgmr.msra.gmra.mxu2 %vm1523_vm7, %v1481_v53 }
 0x722   : > { %v1472_v11 = vpop.permute.xlu0 %1471 }
 0x723   : > { %v1483_v19 = vsel %vm1479_vm6, %v1478_v17, %v1472_v11 }
 0x72c   : > { %2196 = vmatmul.msk.bf16.gmra.mxu2 %vm1523_vm7, %v1483_v19 }
 0x79f   : > { %v1537_v6 = vpop.f32.mrf.mxu2 }
 0x7a0   : > { %v1538_v16 = vadd.f32 %v2342_v62, %v1537_v6 }
 0x7a2   : > { %v1547_v33 = vmax.f32 %v1538_v16, 0.0 }
 0x7a4   : > { %v1551_v27 = vmul.f32 %v1547_v33, %v2652_v13 }
 0x7a6   : > { %v1596_v40 = vpack.c.bf16 %v1551_v27, %v1551_v27  ;;  %v1580_v18 = vrot.slane %v1551_v27, 7  ;;  %v1600_v54 = vrot.slane %v1551_v27, 1 }
 0x7a7   : > { %v1539_v35 = vpop.f32.mrf.mxu2 }
 0x7a8   : > { %v1540_v38 = vadd.f32 %v2342_v62, %v1539_v35  ;;  %v1630_v12 = vunpack.c.l.b16 %v1596_v40 }
 0x7aa   : > { %v1548_v39 = vmax.f32 %v1540_v38, 0.0 }
 0x7ac   : > { %v1552_v28 = vmul.f32 %v1548_v39, %v2658_v14  ;;  %v2276_v39 = vld [vmem:[%s2613_s15 + $0x10] sm:$0xff] }
 0x7ae   : > { %v1581_v41 = vrot.slane %v1552_v28, 7  ;;  %v1597_v42 = vpack.c.bf16 %v1552_v28, %v1552_v28  ;;  %v1601_v47 = vrot.slane %v1552_v28, 1 }
 0x7af   : > { %v1542_v43 = vpop.f32.mrf.mxu2 }
 0x7b0   : > { %v1543_v44 = vadd.f32 %v2342_v62, %v1542_v43  ;;  %v1631_v45 = vunpack.c.l.b16 %v1597_v42  ;;  %v1586_v52 = vsel %vm1353_vm10, %v1580_v18, %v1581_v41  ;;  %v1606_v34 = vsel %vm1398_vm15, %v1600_v54, %v1601_v47 }
 0x7b1   : > { %v1612_v1 = vpack.c.bf16 %v1606_v34, %v1606_v34  ;;  %v1593_v16 = vpack.c.bf16 %v1586_v52, %v1586_v52  ;;  %v2343_v34 = vld [vmem:[%s680_s16] ss:$0 sm:$0xff] }
 0x7b2   : > { %v1549_v48 = vmax.f32 %v1543_v44, 0.0  ;;  %v1634_v49 = vpack.c.b16 %v1631_v45, %v1630_v12  ;;  %v2275_v12 = vld [vmem:[%s2613_s15 + $0x8] sm:$0xff] }
 0x7b3   : > { %v1644_v31 = vunpack.c.l.b16 %v1612_v1  ;;  %v1621_v42 = vunpack.c.l.b16 %v1593_v16 }
 0x7b4   : > { %v1553_v32 = vmul.f32 %v1549_v48, %v2682_v25  ;;  %1636 = vrot.lane.b32.xlu1 %v1634_v49, %s2456_s17 }
 0x7b6   : > { %v1582_v55 = vrot.slane %v1553_v32, 7  ;;  %v1602_v56 = vrot.slane %v1553_v32, 1  ;;  %v1598_v8 = vpack.c.bf16 %v1553_v32, %v1553_v32 }
 0x7b7   : > { %v1544_v57 = vpop.f32.mrf.mxu2 }
 0x7b8   : > { %v1605_v59 = vsel %vm1398_vm15, %v1601_v47, %v1602_v56  ;;  %v1545_v60 = vadd.f32 %v2342_v62, %v1544_v57  ;;  %v1585_v0 = vsel %vm1353_vm10, %v1581_v41, %v1582_v55  ;;  %v1632_v21 = vunpack.c.l.b16 %v1598_v8 }
 0x7b9   : > { %v1609_v2 = vmul.f32 %v2888_v3, %v1605_v59  ;;  %v1590_v9 = vmul.f32 %v2894_v20, %v1585_v0  ;;  %v2277_v3 = vld [vmem:[%s2613_s15 + $0x18] sm:$0xff] }
 0x7ba   : > { %v1550_v61 = vmax.f32 %v1545_v60, 0.0  ;;  %1743 = vmatpush.bf16.msra.mxu3 %v2277_v3 }
 0x7bb   : > { %v1613_v4 = vpack.c.bf16 %v1609_v2, %v1609_v2  ;;  %v1594_v15 = vpack.c.bf16 %v1590_v9, %v1590_v9 }
 0x7bc   : > { %v1554_v5 = vmul.f32 %v1550_v61, %v2684_v26 }
 0x7bd   : > { %v1645_v53 = vunpack.c.l.b16 %v1613_v4  ;;  %v1622_v40 = vunpack.c.l.b16 %v1594_v15 }
 0x7be   : > { %v1583_v10 = vrot.slane %v1554_v5, 7  ;;  %v1603_v11 = vrot.slane %v1554_v5, 1  ;;  %v1599_v17 = vpack.c.bf16 %v1554_v5, %v1554_v5  ;;  %1744 = vmatpush.bf16.msra.mxu3 %v2276_v39 }
 0x7bf   : > { %v1648_v19 = vpack.c.b16 %v1645_v53, %v1644_v31 }
 0x7c0   : > { %v1633_v24 = vunpack.c.l.b16 %v1599_v17  ;;  %v1607_v51 = vsel %vm1398_vm15, %v1603_v11, %v1600_v54  ;;  %v1587_v62 = vsel %vm1353_vm10, %v1583_v10, %v1580_v18  ;;  %v1584_v33 = vsel %vm1353_vm10, %v1582_v55, %v1583_v10 }
 0x7c1   : > { %2245 = vmatmul.msk.bf16.vlgmr.msra.gmra.mxu0 %vm1479_vm6, %v1648_v19  ;;  %v1588_v6 = vmul.f32 %v2894_v20, %v1587_v62  ;;  %v1595_v27 = vpack.c.bf16 %v1584_v33, %v1584_v33  ;;  %v1611_v38 = vmul.f32 %v2906_v22, %v1607_v51  ;;  %v1604_v20 = vsel %vm1398_vm15, %v1602_v56, %v1603_v11 }
 0x7c2   : > { %v1635_v35 = vpack.c.b16 %v1633_v24, %v1632_v21  ;;  %v1614_v22 = vpack.c.bf16 %v1604_v20, %v1604_v20  ;;  %1745 = vmatpush.bf16.msra.mxu3 %v2275_v12 }
 0x7c3   : > { %v1592_v28 = vpack.c.bf16 %v1588_v6, %v1588_v6  ;;  %v1623_v18 = vunpack.c.l.b16 %v1595_v27  ;;  %v1615_v44 = vpack.c.bf16 %v1611_v38, %v1611_v38 }
 0x7c4   : > { %1638 = vrot.lane.b32.xlu0 %v1635_v35, %s2456_s17  ;;  %v1646_v47 = vunpack.c.l.b16 %v1614_v22 }
 0x7c5   : > { %v1620_v41 = vunpack.c.l.b16 %v1592_v28  ;;  %v1625_v43 = vpack.c.b16 %v1623_v18, %v1622_v40  ;;  %v1647_v52 = vunpack.c.l.b16 %v1615_v44 }
 0x7c6   : > { %1746 = vmatpush.bf16.msra.mxu3 %v2274_v37 }
 0x7c7   : > { %v1624_v45 = vpack.c.b16 %v1621_v42, %v1620_v41  ;;  %v1649_v48 = vpack.c.b16 %v1647_v52, %v1646_v47 }
 0x7d1   : > { %2246 = vmatmul.msk.bf16.gmra.mxu0 %vm1479_vm6, %v1649_v48 }
 0x826   : > { %v1637_v49 = vpop.permute.xlu1 %1636 }
 0x827   : > { %v1652_v50 = vsel %vm1479_vm6, %v1624_v45, %v1637_v49 }
 0x828   : > { %1747 = vmatmul.bf16.vlgmr.msra.gmra.mxu3 %v1652_v50 }
 0x836   : > { %v1639_v7 = vpop.permute.xlu0 %1638 }
 0x837   : > { %v1656_v54 = vsel %vm1479_vm6, %v1625_v43, %v1639_v7 }
 0x838   : > { %1752 = vmatmul.bf16.gmra.mxu3 %v1656_v54 }
 0x83e   : > { %v1767_v32 = vpop.f32.mrf.mxu0 }
 0x846   : > { %v1769_v59 = vpop.f32.mrf.mxu0 }
 0x84e   : > { %v1772_v46 = vpop.f32.mrf.mxu0 }
 0x856   : > { %v1774_v21 = vpop.f32.mrf.mxu0 }
 0x8ab   : > { %v1748_v55 = vpop.f32.mrf.mxu3 }
 0x8ac   : > { %v1749_v56 = vadd.f32 %v2343_v34, %v1748_v55 }
 0x8ae   : > { %v1768_v57 = vadd.f32 %v1767_v32, %v1749_v56 }
 0x8b0   : > { %v1777_v58 = vmul.f32 %v1768_v57, %v2652_v13 }
 0x8b2   : > { %v1781_v60 = vadd.f32 %v1777_v58, %v2849_v30 }
 0x8b3   : > { %v1750_v0 = vpop.f32.mrf.mxu3 }
 0x8b4   : > { %v1751_v1 = vadd.f32 %v2343_v34, %v1750_v0  ;;  %v1787_v2 = vsel %vm795_vm3, %v1781_v60, 0.0 }
 0x8b5   : > { %1788 = vadd.xlane.f32.xlu2 %v1787_v2  ;;  %v2345_v2 = vld [vmem:[%s686_s14] ss:$0 sm:$0xff] }
 0x8b6   : > { %v1770_v61 = vadd.f32 %v1769_v59, %v1751_v1 }
 0x8b8   : > { %v1778_v4 = vmul.f32 %v1770_v61, %v2658_v14 }
 0x8ba   : > { %v1782_v8 = vadd.f32 %v1778_v4, %v2841_v23 }
 0x8bb   : > { %v1753_v5 = vpop.f32.mrf.mxu3 }
 0x8bc   : > { %v1754_v9 = vadd.f32 %v2343_v34, %v1753_v5  ;;  %v1790_v31 = vsel %vm795_vm3, %v1782_v8, 0.0 }
 0x8bd   : > { %1791 = vadd.xlane.f32.xlu1 %v1790_v31 }
 0x8be   : > { %v1773_v53 = vadd.f32 %v1772_v46, %v1754_v9 }
 0x8c0   : > { %v1779_v10 = vmul.f32 %v1773_v53, %v2682_v25 }
 0x8c2   : > { %v1783_v30 = vadd.f32 %v1779_v10, %v2877_v63 }
 0x8c3   : > { %v1755_v11 = vpop.f32.mrf.mxu3 }
 0x8c4   : > { %v1756_v17 = vadd.f32 %v2343_v34, %v1755_v11  ;;  %v1793_v19 = vsel %vm795_vm3, %v1783_v30, 0.0 }
 0x8c5   : > { %1794 = vadd.xlane.f32.xlu0 %v1793_v19 }
 0x8c6   : > { %v1775_v3 = vadd.f32 %v1774_v21, %v1756_v17 }
 0x8c8   : > { %v1780_v23 = vmul.f32 %v1775_v3, %v2684_v26 }
 0x8ca   : > { %v1784_v24 = vadd.f32 %v1780_v23, %v2900_v29 }
 0x8cc   : > { %v1796_v51 = vsel %vm795_vm3, %v1784_v24, 0.0 }
 0x8cd   : > { %1797 = vadd.xlane.f32.xlu2 %v1796_v51 }
 0x928   : > { %v1789_v62 = vpop.xlane.xlu2 %1788 }
 0x929   : > { %v1799_v15 = vmul.f32 %v1789_v62, %v2805_v36 }
 0x92b   : > { %v1803_v6 = vsub.f32 %v1781_v60, %v1799_v15  ;;  %v2344_v60 = vld [vmem:[%s683_s1] ss:$0 sm:$0xff]  ;;  %s3124_s1 = sld [smem:[#allocation15_spill]] (!%p2247_p5) }
 0x92d   : > { %v1807_v16 = vmul.f32 %v1803_v6, %v1803_v6 }
 0x92f   : > { %v1811_v63 = vsel %vm795_vm3, %v1807_v16, 0.0 }
 0x930   : > { %v1792_v33 = vpop.xlane.xlu1 %1791  ;;  %1812 = vadd.xlane.f32.xlu1 %v1811_v63 }
 0x931   : > { %v1800_v35 = vmul.f32 %v1792_v33, %v2805_v36 }
 0x933   : > { %v1804_v27 = vsub.f32 %v1782_v8, %v1800_v35 }
 0x935   : > { %v1808_v38 = vmul.f32 %v1804_v27, %v1804_v27 }
 0x937   : > { %v1814_v39 = vsel %vm795_vm3, %v1808_v38, 0.0 }
 0x938   : > { %v1795_v28 = vpop.xlane.xlu0 %1794  ;;  %1815 = vadd.xlane.f32.xlu2 %v1814_v39 }
 0x939   : > { %v1801_v29 = vmul.f32 %v1795_v28, %v2805_v36 }
 0x93b   : > { %v3004_v40 = vsub.f32 %v1783_v30, %v1801_v29 }
 0x93d   : > { %v1809_v18 = vmul.f32 %v3004_v40, %v3004_v40 }
 0x93f   : > { %v1817_v41 = vsel %vm795_vm3, %v1809_v18, 0.0 }
 0x940   : > { %1818 = vadd.xlane.f32.xlu0 %v1817_v41  ;;  %v1798_v42 = vpop.xlane.xlu2 %1797 }
 0x941   : > { %v1802_v20 = vmul.f32 %v1798_v42, %v2805_v36 }
 0x943   : > { %v3010_v43 = vsub.f32 %v1784_v24, %v1802_v20 }
 0x945   : > { %v1810_v44 = vmul.f32 %v3010_v43, %v3010_v43 }
 0x947   : > { %v1820_v12 = vsel %vm795_vm3, %v1810_v44, 0.0 }
 0x948   : > { %1821 = vadd.xlane.f32.xlu1 %v1820_v12 }
 0x9a3   : > { %v1813_v45 = vpop.xlane.xlu1 %1812 }
 0x9a4   : > { %v1823_v22 = vmul.f32 %v1813_v45, %v2805_v36 }
 0x9a6   : > { %v1827_v52 = vadd.f32 0.0001, %v1823_v22 }
 0x9a8   : > { %2388 = vrsqrt.f32 %v1827_v52  ;;  %vm1837_vm10 = vweird.f32 %v1827_v52 }
 0x9ab   : > { %v1816_v37 = vpop.xlane.xlu2 %1815 }
 0x9ac   : > { %v1824_v47 = vmul.f32 %v1816_v37, %v2805_v36 }
 0x9ae   : > { %v2389_v48 = vpop.eup %2388  ;;  %v1828_v49 = vadd.f32 0.0001, %v1824_v47 }
 0x9af   : > { %v1832_v50 = vmul.f32 %v2389_v48, %v1827_v52  ;;  %vm1838_vm9 = vweird.f32 %v2389_v48 }
 0x9b0   : > { %2390 = vrsqrt.f32 %v1828_v49  ;;  %vm1839_vm11 = vmor %vm1837_vm10, %vm1838_vm9  ;;  %vm1847_vm13 = vweird.f32 %v1828_v49 }
 0x9b1   : > { %v1833_v7 = vmul.f32 %v2389_v48, %v1832_v50 }
 0x9b3   : > { %v1834_v54 = vmul.f32 0.5, %v1833_v7  ;;  %v1819_v32 = vpop.xlane.xlu0 %1818 }
 0x9b4   : > { %v1825_v34 = vmul.f32 %v1819_v32, %v2805_v36 }
 0x9b5   : > { %v1835_v55 = vsub.f32 1.5, %v1834_v54 }
 0x9b6   : > { %v2391_v56 = vpop.eup %2390  ;;  %v1829_v57 = vadd.f32 0.0001, %v1825_v34 }
 0x9b7   : > { %v1836_v58 = vmul.f32 %v2389_v48, %v1835_v55  ;;  %v1842_v59 = vmul.f32 %v2391_v56, %v1828_v49  ;;  %vm1848_vm12 = vweird.f32 %v2391_v56 }
 0x9b8   : > { %2392 = vrsqrt.f32 %v1829_v57  ;;  %vm1849_vm14 = vmor %vm1847_vm13, %vm1848_vm12  ;;  %vm1857_vm0 = vweird.f32 %v1829_v57 }
 0x9b9   : > { %v1840_v0 = vsel %vm1839_vm11, %v2389_v48, %v1836_v58  ;;  %v1843_v1 = vmul.f32 %v2391_v56, %v1842_v59 }
 0x9ba   : > { %v1871_v61 = vmul.f32 %v1840_v0, %v1803_v6 }
 0x9bb   : > { %v1844_v4 = vmul.f32 0.5, %v1843_v1  ;;  %v1822_v8 = vpop.xlane.xlu1 %1821 }
 0x9bc   : > { %v1878_v46 = vmul.f32 %v2344_v60, %v1871_v61  ;;  %v1826_v5 = vmul.f32 %v1822_v8, %v2805_v36 }
 0x9bd   : > { %v1845_v9 = vsub.f32 1.5, %v1844_v4 }
 0x9be   : > { %v2393_v31 = vpop.eup %2392  ;;  %v1885_v53 = vadd.f32 %v2345_v2, %v1878_v46  ;;  %v1830_v10 = vadd.f32 0.0001, %v1826_v5 }
 0x9bf   : > { %v1846_v30 = vmul.f32 %v2391_v56, %v1845_v9  ;;  %v1852_v11 = vmul.f32 %v2393_v31, %v1829_v57  ;;  %vm1858_vm15 = vweird.f32 %v2393_v31 }
 0x9c0   : > { %1889 = vst.msk [vmem:[#allocation2] sm:$0xff] %vm795_vm3, %v1885_v53  ;;  %2394 = vrsqrt.f32 %v1830_v10  ;;  %vm1859_vm1 = vmor %vm1857_vm0, %vm1858_vm15  ;;  %vm1867_vm4 = vweird.f32 %v1830_v10 }
 0x9c1   : > { %v1850_v17 = vsel %vm1849_vm14, %v2391_v56, %v1846_v30  ;;  %v1853_v19 = vmul.f32 %v2393_v31, %v1852_v11 }
 0x9c2   : > { %v1872_v21 = vmul.f32 %v1850_v17, %v1804_v27 }
 0x9c3   : > { %v1854_v3 = vmul.f32 0.5, %v1853_v19 }
 0x9c4   : > { %v1879_v23 = vmul.f32 %v2344_v60, %v1872_v21 }
 0x9c5   : > { %v1855_v24 = vsub.f32 1.5, %v1854_v3 }
 0x9c6   : > { %v2395_v36 = vpop.eup %2394  ;;  %v1886_v51 = vadd.f32 %v2345_v2, %v1879_v23 }
 0x9c7   : > { %v1856_v62 = vmul.f32 %v2393_v31, %v1855_v24  ;;  %v1862_v15 = vmul.f32 %v2395_v36, %v1830_v10  ;;  %vm1868_vm2 = vweird.f32 %v2395_v36 }
 0x9c8   : > { %1890 = vst.msk [vmem:[#allocation2 + $0x8] sm:$0xff] %vm795_vm3, %v1886_v51  ;;  %vm1869_vm5 = vmor %vm1867_vm4, %vm1868_vm2 }
 0x9c9   : > { %v1860_v6 = vsel %vm1859_vm1, %v2393_v31, %v1856_v62  ;;  %v1863_v16 = vmul.f32 %v2395_v36, %v1862_v15 }
 0x9ca   : > { %v1873_v63 = vmul.f32 %v1860_v6, %v3004_v40 }
 0x9cb   : > { %v1864_v33 = vmul.f32 0.5, %v1863_v16 }
 0x9cc   : > { %v1880_v35 = vmul.f32 %v2344_v60, %v1873_v63 }
 0x9cd   : > { %v1865_v38 = vsub.f32 1.5, %v1864_v33 }
 0x9ce   : > { %v1887_v27 = vadd.f32 %v2345_v2, %v1880_v35 }
 0x9cf   : > { %v1866_v39 = vmul.f32 %v2395_v36, %v1865_v38 }
 0x9d0   : > { %1891 = vst.msk [vmem:[#allocation2 + $0x10] sm:$0xff] %vm795_vm3, %v1887_v27 }
 0x9d1   : > { %v1870_v28 = vsel %vm1869_vm5, %v2395_v36, %v1866_v39 }
 0x9d2   : > { %v1874_v29 = vmul.f32 %v1870_v28, %v3010_v43 }
 0x9d4   : > { %v1881_v18 = vmul.f32 %v2344_v60, %v1874_v29  ;;  %1896 = sbr.rel (%p2247_p5) target bundleno = 2669 (0xa6d), region = 88 }
 0x9d6   : > { %v1888_v41 = vadd.f32 %v2345_v2, %v1881_v18 }
 0x9d8   : > { %1892 = vst.msk [vmem:[#allocation2 + $0x18] sm:$0xff] %vm795_vm3, %v1888_v41 }
 0x9d9   : > { %v2287_v40 = vld [vmem:[%s3124_s1 + $0x8] sm:$0xff]  ;;  %v1897_v42 = vmul.f32 %v1885_v53, %v2652_v13  ;;  %v1898_v20 = vmul.f32 %v1886_v51, %v2658_v14  ;;  %v1899_v44 = vmul.f32 %v1887_v27, %v2682_v25  ;;  %v1900_v12 = vmul.f32 %v1888_v41, %v2684_v26  ;;  %v2286_v43 = vld [vmem:[%s3124_s1] sm:$0xff] }
 0x9da   : > { %1939 = vmatpush.bf16.msra.mxu0 %v2287_v40  ;;  %2288 = vmatpush.bf16.msra.mxu1 %v2287_v40  ;;  %v2396_v52 = vld [vmem:[%s3125_s28] ss:$0 sm:$0xff] }
 0x9db   : > { %1901 = vst.msk [vmem:[#allocation5] sm:$0xff] %vm795_vm3, %v1897_v42  ;;  %v1905_v45 = vpack.c.bf16 %v1898_v20, %v1897_v42  ;;  %v1906_v22 = vpack.c.bf16 %v1900_v12, %v1899_v44 }
 0x9dc   : > { %1902 = vst.msk [vmem:[#allocation5 + $0x8] sm:$0xff] %vm795_vm3, %v1898_v20 }
 0x9dd   : > { %1903 = vst.msk [vmem:[#allocation5 + $0x10] sm:$0xff] %vm795_vm3, %v1899_v44 }
 0x9de   : > { %1904 = vst.msk [vmem:[#allocation5 + $0x18] sm:$0xff] %vm795_vm3, %v1900_v12  ;;  %1940 = vmatpush.bf16.msra.mxu0 %v2286_v43  ;;  %2289 = vmatpush.bf16.msra.mxu1 %v2286_v43 }
 0x9e1   : > { %2256 = vmatmul.msk.bf16.vlgmr.msra.gmra.mxu0 %vm795_vm3, %v1905_v45  ;;  %2257 = vmatmul.msk.bf16.vlgmr.msra.gmra.mxu1 %vm795_vm3, %v1906_v22 }
 0xa5e   : > { %v1942_v37 = vpop.f32.mrf.mxu0  ;;  %v1947_v47 = vpop.f32.mrf.mxu1 }
 0xa5f   : > { %v1943_v48 = vadd.f32 %v2396_v52, %v1942_v37  ;;  %v1948_v49 = vadd.f32 %v2396_v52, %v1947_v47 }
 0xa61   : > { %v1952_v50 = vmul.f32 %v1943_v48, %v2652_v13  ;;  %v1954_v7 = vmul.f32 %v1948_v49, %v2682_v25 }
 0xa63   : > { %1956 = vst.msk [vmem:[%s3126_s19] sm:$0xff] %vm840_vm8, %v1952_v50 }
 0xa64   : > { %1958 = vst.msk [vmem:[%s3126_s19 + $0x10] sm:$0xff] %vm840_vm8, %v1954_v7 }
 0xa66   : > { %v1944_v54 = vpop.f32.mrf.mxu0  ;;  %v1949_v32 = vpop.f32.mrf.mxu1 }
 0xa67   : > { %v1945_v34 = vadd.f32 %v2396_v52, %v1944_v54  ;;  %v1950_v55 = vadd.f32 %v2396_v52, %v1949_v32 }
 0xa69   : > { %v1953_v56 = vmul.f32 %v1945_v34, %v2658_v14  ;;  %v1955_v13 = vmul.f32 %v1950_v55, %v2684_v26 }
 0xa6b   : > { %1957 = vst.msk [vmem:[%s3126_s19 + $0x8] sm:$0xff] %vm840_vm8, %v1953_v56 }
 0xa6c   : > { %1959 = vst.msk [vmem:[%s3126_s19 + $0x18] sm:$0xff] %vm840_vm8, %v1955_v13 }
 0xa6d PF: > { %p2296_p6 = scmp.eq.s32.totalorder %s2562_s29, 1  ;;  %s2460_s15 = smov [#allocation5]  }
 0xa6e   : > { %s1965_s24 = sshll.u32 %s2460_s15, 4  ;;  %s3127_s10 = sld [smem:[#allocation17_spill]]  ;;  %s1966_s24 = int_to_ptr.vmem [resolvable:$true] %s1965_s24 }
 0xa6f   : > { %s2461_s2 = smov 128   ;;  %s2462_s26 = smov 8  }
 0xa74   : > { %s1967_s18 = sshll.u32 %s3127_s10, 4  ;;  %s1968_s18 = int_to_ptr.hbm [resolvable:$true] %s1967_s18 }
 0xa75   : > { %2293 = dma.vmem_to_hbm [thread:$0]  (%p2296_p6), %s1966_s24, 512, %s1968_s18, [#allocation6], %s2461_s2, %s2461_s2, %s2462_s26  }
 0xa76   : > { %2444 = dma.done.wait (%p2296_p6), [#allocation6], 512  }
 0xa77   : > { %2446 = vsyncadd (%p2296_p6), [#allocation6], 4294966784 }
 0xa78 PF: > { %s3128_s21 = sld [smem:[#allocation9_spill]] }
 0xa7e   : > { %s37_s28 = sadd.s32 1, %s3128_s21  }
 0xa7f   : > { %p34_p7 = scmp.ge.s32.totalorder %s37_s28, 4  }
 0xa81   :  { %36 = sbr.rel (!%p34_p7) target bundleno = 22 (0x16), region = 156 }
 0xa86   :  { %1990 = vsyncpa [#allocation6], 1 }
 0xa87   :  { %1992 = vsyncpa [#allocation6 + $0x1], 1 }

</bundles_post_ra>
